<compile_context>
chip_gen: v5e
topology: v5e:2x2
jax: 0.10.0
libtpu: 0.0.40
codegen_flags: <defaults>
</compile_context>

<pallas_src>
import functools

import jax
import jax.numpy as jnp
from jax.experimental import pallas as pl
from jax.experimental.pallas import tpu as pltpu


_EPS = 1e-5
_LANE = 128


def _round_up(x, m):
    return ((x + m - 1) // m) * m


def _apply_act(x, activation):
    if activation == "lrelu":
        return jnp.where(x > 0, x, 0.2 * x)
    if activation == "relu":
        return jnp.maximum(x, 0.0)
    if activation == "tanh":
        return jnp.tanh(x)
    return x  # 'no_act'


# ----------------------------------------------------------------------------
# Pallas kernels
# ----------------------------------------------------------------------------
def _conv_act_kernel(p_ref, w_ref, b_ref, o_ref, *, activation):
    """Fused conv(matmul)+bias+activation for layers without InstanceNorm.
    p_ref: (TM, CKp) bf16, w_ref: (CKp, Coutp) bf16, b_ref: (1, Coutp) f32."""
    acc = jnp.dot(p_ref[...], w_ref[...], preferred_element_type=jnp.float32)
    acc = acc + b_ref[...]
    o_ref[...] = _apply_act(acc, activation).astype(o_ref.dtype)


def _conv_stats_kernel(p_ref, w_ref, b_ref, o_ref, sum_ref, ssq_ref):
    """Pass 1 of InstanceNorm layers: conv+bias, stream pre-norm output and
    accumulate per-channel sum / sum-of-squares across the P (spatial) axis.
    sum_ref/ssq_ref blocks are revisited across the (last, 'arbitrary') P axis
    -> they stay resident in VMEM and act as accumulators."""
    @pl.when(pl.program_id(1) == 0)
    def _():
        sum_ref[...] = jnp.zeros_like(sum_ref)
        ssq_ref[...] = jnp.zeros_like(ssq_ref)

    acc = jnp.dot(p_ref[0], w_ref[...], preferred_element_type=jnp.float32)
    acc = acc + b_ref[...]
    o_ref[0] = acc.astype(o_ref.dtype)
    sum_ref[0] += jnp.sum(acc, axis=0, keepdims=True)
    ssq_ref[0] += jnp.sum(acc * acc, axis=0, keepdims=True)


def _norm_act_kernel(x_ref, sum_ref, ssq_ref, o_ref, *, inv_count, activation):
    """Pass 2 of InstanceNorm layers: (x - mean) * rsqrt(var + eps) + act.
    Biased variance and eps=1e-5 match torch.nn.InstanceNorm2d(affine=False)."""
    x = x_ref[0]
    mean = sum_ref[0] * inv_count
    var = jnp.maximum(ssq_ref[0] * inv_count - mean * mean, 0.0)
    y = (x - mean) * jax.lax.rsqrt(var + _EPS)
    o_ref[0] = _apply_act(y, activation).astype(o_ref.dtype)


# ----------------------------------------------------------------------------
# Glue: im2col (NHWC), tile picking, per-block pallas_call wrappers.
# ----------------------------------------------------------------------------
def _im2col_nhwc(x, k, stride, pad):
    """x: [N, H, W, C] -> patches [N, P, K*K*C] with feature order (kh, kw, c)."""
    n, h, w, c = x.shape
    xp = jnp.pad(x, ((0, 0), (pad, pad), (pad, pad), (0, 0)))
    ho = (h + 2 * pad - k) // stride + 1
    wo = (w + 2 * pad - k) // stride + 1
    cols = []
    for kh in range(k):
        for kw in range(k):
            cols.append(xp[:, kh:kh + stride * ho:stride,
                           kw:kw + stride * wo:stride, :])
    cols = jnp.stack(cols, axis=3)                       # [N, Ho, Wo, K*K, C]
    return cols.reshape(n, ho * wo, k * k * c), ho, wo   # [N, P, K*K*C]


def _divisor_tile(dim, target):
    """Largest multiple of 8 that divides `dim` and is <= target, else dim."""
    if dim <= target:
        return dim
    for cand in range((target // 8) * 8, 7, -8):
        if dim % cand == 0:
            return cand
    return dim


def _pick_row_tile(rows, ckp, coutp, vmem_budget, max_tile=4096):
    fixed = 2 * ckp * coutp * 2 + 8 * coutp           # dbl-buffered bf16 weights + bias
    per_row = 2 * ckp * 2 + 2 * coutp * 4             # dbl-buffered bf16 in row + f32 out row
    avail = max(vmem_budget - fixed, 1 << 20)
    cap = max(int(avail // per_row), 8)
    return _divisor_tile(rows, max(8, min(max_tile, cap)))


def _vmem_limit_bytes():
    try:
        cap = int(pltpu.get_tpu_info().vmem_capacity_bytes)
    except Exception:
        cap = 64 << 20          # conservative default (v7x per-TC VMEM)
    return int(min(cap, 128 << 20) * 0.85)


def conv_block_pallas(x_nhwc, w, b, *, stride, pad, activation, use_norm,
                      vmem_limit):
    """One ConvBlock on NHWC input.  w: [Cout, Cin, K, K] (OIHW), b: [Cout].
    Returns NHWC output [N, Ho, Wo, Cout]."""
    n = x_nhwc.shape[0]
    cin = x_nhwc.shape[3]
    cout, cin_w, k, _ = w.shape
    assert cin_w == cin, (cin_w, cin)

    # TODO(synk): form patches inside the kernel from NHWC row bands (with the
    # halo rows) to avoid materializing the K*K-expanded im2col array in HBM.
    patches, ho, wo = _im2col_nhwc(x_nhwc, k, stride, pad)   # [N, P, CK] f32
    p_dim = ho * wo
    ck = cin * k * k
    ckp = _round_up(ck, _LANE)
    coutp = _round_up(cout, _LANE)

    # bf16 MXU operands (f32 accumulation inside the kernel); pad CK and Cout
    # to 128 multiples so loads, the MXU K dim, and stores are unmasked.
    patches = jnp.pad(patches.astype(jnp.bfloat16),
                      ((0, 0), (0, 0), (0, ckp - ck)))
    w_mat = jnp.transpose(w, (2, 3, 1, 0)).reshape(ck, cout)   # rows = (kh, kw, c)
    w_mat = jnp.pad(w_mat, ((0, ckp - ck), (0, coutp - cout))).astype(jnp.bfloat16)
    b_mat = jnp.pad(b, (0, coutp - cout)).reshape(1, coutp).astype(jnp.float32)

    budget = int(vmem_limit * 0.7)

    if not use_norm:
        # Fold batch into the row dim: one long M keeps the MXU fed and the
        # pipeline deep even at batch=2.
        m = n * p_dim
        rows = patches.reshape(m, ckp)
        tm = _pick_row_tile(m, ckp, coutp, budget)
        out = pl.pallas_call(
            functools.partial(_conv_act_kernel, activation=activation),
            out_shape=jax.ShapeDtypeStruct((m, coutp), jnp.float32),
            grid=(m // tm,),
            in_specs=[
                pl.BlockSpec((tm, ckp), lambda i: (i, 0)),
                pl.BlockSpec((ckp, coutp), lambda i: (0, 0)),
                pl.BlockSpec((1, coutp), lambda i: (0, 0)),
            ],
            out_specs=pl.BlockSpec((tm, coutp), lambda i: (i, 0)),
            compiler_params=pltpu.CompilerParams(
                dimension_semantics=("parallel",),
                vmem_limit_bytes=vmem_limit),
        )(rows, w_mat, b_mat)
        out = out.reshape(n, ho, wo, coutp)
    else:
        tp = _pick_row_tile(p_dim, ckp, coutp, budget)
        p_tiles = p_dim // tp

        # Pass 1: conv + bias, accumulate per-sample/per-channel sum & sum-sq.
        conv_out, s_sum, s_ssq = pl.pallas_call(
            _conv_stats_kernel,
            out_shape=(
                jax.ShapeDtypeStruct((n, p_dim, coutp), jnp.float32),
                jax.ShapeDtypeStruct((n, 1, coutp), jnp.float32),
                jax.ShapeDtypeStruct((n, 1, coutp), jnp.float32),
            ),
            grid=(n, p_tiles),
            in_specs=[
                pl.BlockSpec((1, tp, ckp), lambda i, j: (i, j, 0)),
                pl.BlockSpec((ckp, coutp), lambda i, j: (0, 0)),
                pl.BlockSpec((1, coutp), lambda i, j: (0, 0)),
            ],
            out_specs=(
                pl.BlockSpec((1, tp, coutp), lambda i, j: (i, j, 0)),
                pl.BlockSpec((1, 1, coutp), lambda i, j: (i, 0, 0)),  # resident over j
                pl.BlockSpec((1, 1, coutp), lambda i, j: (i, 0, 0)),  # resident over j
            ),
            compiler_params=pltpu.CompilerParams(
                dimension_semantics=("parallel", "arbitrary"),
                vmem_limit_bytes=vmem_limit),
        )(patches, w_mat, b_mat)

        # Pass 2: normalize + LeakyReLU, tile by tile.
        out = pl.pallas_call(
            functools.partial(_norm_act_kernel,
                              inv_count=1.0 / float(p_dim),
                              activation=activation),
            out_shape=jax.ShapeDtypeStruct((n, p_dim, coutp), jnp.float32),
            grid=(n, p_tiles),
            in_specs=[
                pl.BlockSpec((1, tp, coutp), lambda i, j: (i, j, 0)),
                pl.BlockSpec((1, 1, coutp), lambda i, j: (i, 0, 0)),
                pl.BlockSpec((1, 1, coutp), lambda i, j: (i, 0, 0)),
            ],
            out_specs=pl.BlockSpec((1, tp, coutp), lambda i, j: (i, j, 0)),
            compiler_params=pltpu.CompilerParams(
                dimension_semantics=("parallel", "parallel"),
                vmem_limit_bytes=vmem_limit),
        )(conv_out, s_sum, s_ssq)
        out = out.reshape(n, ho, wo, coutp)

    if coutp != cout:
        out = out[..., :cout]
    return out


# ----------------------------------------------------------------------------
# Discriminator: 5 ConvBlocks, matching the PyTorch module.
# ----------------------------------------------------------------------------
def make_discriminator_params(key, input_dim, num_filter, output_dim):
    # (Cin, Cout, k, stride, pad, activation, instance_norm)
    cfg = [
        (input_dim,      num_filter,     4, 2, 1, "lrelu",  False),
        (num_filter,     num_filter * 2, 4, 2, 1, "lrelu",  True),
        (num_filter * 2, num_filter * 4, 4, 2, 1, "lrelu",  True),
        (num_filter * 4, num_filter * 8, 4, 1, 1, "lrelu",  True),
        (num_filter * 8, output_dim,     4, 1, 1, "no_act", False),
    ]
    params = []
    for (cin, cout, k, s, p, act, norm) in cfg:
        key, wkey, bkey = jax.random.split(key, 3)
        # normal_weight_init(mean=0.0, std=0.02); small random biases.
        w = 0.02 * jax.random.normal(wkey, (cout, cin, k, k), dtype=jnp.float32)
        b = 0.02 * jax.random.normal(bkey, (cout,), dtype=jnp.float32)
        params.append(dict(w=w, b=b, stride=s, pad=p, activation=act, norm=norm))
    return params


def discriminator_forward(x_nchw, params, vmem_limit):
    out = jnp.transpose(x_nchw, (0, 2, 3, 1))        # NCHW -> NHWC once
    for layer in params:
        out = conv_block_pallas(
            out, layer["w"], layer["b"],
            stride=layer["stride"], pad=layer["pad"],
            activation=layer["activation"], use_norm=layer["norm"],
            vmem_limit=vmem_limit)
    return jnp.transpose(out, (0, 3, 1, 2))          # NHWC -> NCHW at boundary


# ----------------------------------------------------------------------------
# Pure-JAX reference (f32, HIGHEST precision) for a sanity check.
# ----------------------------------------------------------------------------
def _ref_block(x, layer):
    out = jax.lax.conv_general_dilated(
        x, layer["w"], (layer["stride"], layer["stride"]),
        [(layer["pad"], layer["pad"])] * 2,
        dimension_numbers=("NCHW", "OIHW", "NCHW"),
        precision=jax.lax.Precision.HIGHEST,
    ) + layer["b"][None, :, None, None]
    if layer["norm"]:
        mean = out.mean(axis=(2, 3), keepdims=True)
        var = ((out - mean) ** 2).mean(axis=(2, 3), keepdims=True)
        out = (out - mean) / jnp.sqrt(var + _EPS)
    if layer["activation"] == "lrelu":
        out = jnp.where(out > 0, out, 0.2 * out)
    elif layer["activation"] == "relu":
        out = jnp.maximum(out, 0.0)
    elif layer["activation"] == "tanh":
        out = jnp.tanh(out)
    return out


def _ref_forward(x, params):
    out = x
    for layer in params:
        out = _ref_block(out, layer)
    return out


if __name__ == "__main__":
    key = jax.random.PRNGKey(0)
    key, xkey = jax.random.split(key)

    # batch=2, input_dim=4, num_filter=8, output_dim=1, spatial 32x32
    # (smallest spatial size that keeps all 5 conv layers valid)
    # -> output shape [2, 1, 2, 2].
    N, INPUT_DIM, NUM_FILTER, OUTPUT_DIM, SPATIAL = 2, 4, 8, 1, 32
    x = jax.random.normal(xkey, (N, INPUT_DIM, SPATIAL, SPATIAL), dtype=jnp.float32)
    params = make_discriminator_params(key, INPUT_DIM, NUM_FILTER, OUTPUT_DIM)

    vmem_limit = _vmem_limit_bytes()
    fwd = jax.jit(lambda xx: discriminator_forward(xx, params, vmem_limit))
    out = jax.block_until_ready(fwd(x))

    ref = jax.block_until_ready(_ref_forward(x, params))
    assert out.shape == ref.shape, (out.shape, ref.shape)
    max_err = float(jnp.max(jnp.abs(out - ref)))
    # bf16 MXU operands (f32 accumulation) vs an f32 HIGHEST-precision reference.
    assert jnp.allclose(out, ref, atol=5e-2, rtol=5e-2), max_err
    print("KERNEL_OK")
</pallas_src>

<mosaic_0001>
module attributes {stable_mosaic.version = 11 : i64} {
  func.func @_conv_act_kernel(%arg0: i32, %arg1: memref<512x128xbf16, #tpu.memory_space<vmem>>, %arg2: memref<128x128xbf16, #tpu.memory_space<vmem>>, %arg3: memref<1x128xf32, #tpu.memory_space<vmem>>, %arg4: memref<512x128xf32, #tpu.memory_space<vmem>>) attributes {dimension_semantics = [#tpu.dimension_semantics<parallel>], iteration_bounds = array<i64: 1>, scalar_prefetch = 0 : i64, scratch_operands = 0 : i64, tpu.core_type = #tpu.core_type<tc>, window_params = [{transform_indices = @transform_0, window_bounds = array<i64: 512, 128>}, {pipeline_mode = #tpu.pipeline_mode<synchronous>, transform_indices = @transform_1, window_bounds = array<i64: 128, 128>}, {pipeline_mode = #tpu.pipeline_mode<synchronous>, transform_indices = @transform_2, window_bounds = array<i64: 1, 128>}, {transform_indices = @transform_3, window_bounds = array<i64: 512, 128>}]} {
    %c0 = arith.constant 0 : index
    %c0_0 = arith.constant 0 : index
    %0 = vector.load %arg1[%c0, %c0_0] : memref<512x128xbf16, #tpu.memory_space<vmem>>, vector<512x128xbf16>
    %c0_1 = arith.constant 0 : index
    %c0_2 = arith.constant 0 : index
    %1 = vector.load %arg2[%c0_1, %c0_2] : memref<128x128xbf16, #tpu.memory_space<vmem>>, vector<128x128xbf16>
    %cst = arith.constant dense<0.000000e+00> : vector<512x128xf32>
    %2 = tpu.matmul %0, %1, %cst {dimension_numbers = #tpu.dot_dimension_numbers<[1], [0], [0], [1], [0, 0, 1, 1], [], []>} : vector<512x128xbf16>, vector<128x128xbf16>, vector<512x128xf32> -> vector<512x128xf32>
    %c0_3 = arith.constant 0 : index
    %c0_4 = arith.constant 0 : index
    %3 = vector.load %arg3[%c0_3, %c0_4] : memref<1x128xf32, #tpu.memory_space<vmem>>, vector<1x128xf32>
    %4 = vector.broadcast %3 : vector<1x128xf32> to vector<512x128xf32>
    %5 = arith.addf %2, %4 : vector<512x128xf32>
    %cst_5 = arith.constant 0.000000e+00 : f32
    %6 = vector.broadcast %cst_5 : f32 to vector<512x128xf32>
    %7 = arith.cmpf ogt, %5, %6 : vector<512x128xf32>
    %cst_6 = arith.constant 2.000000e-01 : f32
    %8 = vector.broadcast %cst_6 : f32 to vector<512x128xf32>
    %9 = arith.mulf %8, %5 : vector<512x128xf32>
    %10 = arith.select %7, %5, %9 : vector<512x128xi1>, vector<512x128xf32>
    %c0_7 = arith.constant 0 : index
    %c0_8 = arith.constant 0 : index
    %11 = vector.load %arg4[%c0_7, %c0_8] : memref<512x128xf32, #tpu.memory_space<vmem>>, vector<512x128xf32>
    tpu.vector_store %arg4[%c0_7, %c0_8], %10 {strides = array<i32>} : memref<512x128xf32, #tpu.memory_space<vmem>>, vector<512x128xf32>,
    return
  }
  func.func @transform_0(%arg0: i32) -> (i32, i32) {
    %c0_i32 = arith.constant 0 : i32
    %c0_i32_0 = arith.constant 0 : i32
    return %arg0, %c0_i32 : i32, i32
  }
  func.func @transform_1(%arg0: i32) -> (i32, i32) {
    %c0_i32 = arith.constant 0 : i32
    %c0_i32_0 = arith.constant 0 : i32
    %c0_i32_1 = arith.constant 0 : i32
    return %c0_i32, %c0_i32_0 : i32, i32
  }
  func.func @transform_2(%arg0: i32) -> (i32, i32) {
    %c0_i32 = arith.constant 0 : i32
    %c0_i32_0 = arith.constant 0 : i32
    %c0_i32_1 = arith.constant 0 : i32
    return %c0_i32, %c0_i32_0 : i32, i32
  }
  func.func @transform_3(%arg0: i32) -> (i32, i32) {
    %c0_i32 = arith.constant 0 : i32
    %c0_i32_0 = arith.constant 0 : i32
    return %arg0, %c0_i32 : i32, i32
  }
}

module attributes {stable_mosaic.version = 11 : i64} {
  func.func @_conv_stats_kernel(%arg0: i32, %arg1: i32, %arg2: memref<1x64x128xbf16, #tpu.memory_space<vmem>>, %arg3: memref<128x128xbf16, #tpu.memory_space<vmem>>, %arg4: memref<1x128xf32, #tpu.memory_space<vmem>>, %arg5: memref<1x64x128xf32, #tpu.memory_space<vmem>>, %arg6: memref<1x1x128xf32, #tpu.memory_space<vmem>>, %arg7: memref<1x1x128xf32, #tpu.memory_space<vmem>>) attributes {dimension_semantics = [#tpu.dimension_semantics<parallel>, #tpu.dimension_semantics<arbitrary>], iteration_bounds = array<i64: 2, 1>, scalar_prefetch = 0 : i64, scratch_operands = 0 : i64, tpu.core_type = #tpu.core_type<tc>, window_params = [{transform_indices = @transform_0, window_bounds = array<i64: 1, 64, 128>}, {pipeline_mode = #tpu.pipeline_mode<synchronous>, transform_indices = @transform_1, window_bounds = array<i64: 128, 128>}, {pipeline_mode = #tpu.pipeline_mode<synchronous>, transform_indices = @transform_2, window_bounds = array<i64: 1, 128>}, {transform_indices = @transform_3, window_bounds = array<i64: 1, 64, 128>}, {transform_indices = @transform_4, window_bounds = array<i64: 1, 1, 128>}, {transform_indices = @transform_5, window_bounds = array<i64: 1, 1, 128>}]} {
    %c0_i32 = arith.constant 0 : i32
    %0 = arith.cmpi eq, %arg1, %c0_i32 : i32
    %1 = arith.extui %0 : i1 to i32
    %c0_i32_0 = arith.constant 0 : i32
    %2 = arith.cmpi ne, %1, %c0_i32_0 : i32
    scf.if %2 {
      %cst_24 = arith.constant 0.000000e+00 : f32
      %30 = vector.broadcast %cst_24 : f32 to vector<1x1x128xf32>
      %c0_25 = arith.constant 0 : index
      %c0_26 = arith.constant 0 : index
      %c0_27 = arith.constant 0 : index
      %31 = vector.load %arg6[%c0_25, %c0_26, %c0_27] : memref<1x1x128xf32, #tpu.memory_space<vmem>>, vector<1x1x128xf32>
      tpu.vector_store %arg6[%c0_25, %c0_26, %c0_27], %30 {strides = array<i32>} : memref<1x1x128xf32, #tpu.memory_space<vmem>>, vector<1x1x128xf32>,
      %cst_28 = arith.constant 0.000000e+00 : f32
      %32 = vector.broadcast %cst_28 : f32 to vector<1x1x128xf32>
      %c0_29 = arith.constant 0 : index
      %c0_30 = arith.constant 0 : index
      %c0_31 = arith.constant 0 : index
      %33 = vector.load %arg7[%c0_29, %c0_30, %c0_31] : memref<1x1x128xf32, #tpu.memory_space<vmem>>, vector<1x1x128xf32>
      tpu.vector_store %arg7[%c0_29, %c0_30, %c0_31], %32 {strides = array<i32>} : memref<1x1x128xf32, #tpu.memory_space<vmem>>, vector<1x1x128xf32>,
    } else {
    }
    %c0 = arith.constant 0 : index
    %c0_1 = arith.constant 0 : index
    %c0_2 = arith.constant 0 : index
    %3 = vector.load %arg2[%c0, %c0_1, %c0_2] : memref<1x64x128xbf16, #tpu.memory_space<vmem>>, vector<1x64x128xbf16>
    %4 = vector.shape_cast %3 : vector<1x64x128xbf16> to vector<64x128xbf16>
    %c0_3 = arith.constant 0 : index
    %c0_4 = arith.constant 0 : index
    %5 = vector.load %arg3[%c0_3, %c0_4] : memref<128x128xbf16, #tpu.memory_space<vmem>>, vector<128x128xbf16>
    %cst = arith.constant dense<0.000000e+00> : vector<64x128xf32>
    %6 = tpu.matmul %4, %5, %cst {dimension_numbers = #tpu.dot_dimension_numbers<[1], [0], [0], [1], [0, 0, 1, 1], [], []>} : vector<64x128xbf16>, vector<128x128xbf16>, vector<64x128xf32> -> vector<64x128xf32>
    %c0_5 = arith.constant 0 : index
    %c0_6 = arith.constant 0 : index
    %7 = vector.load %arg4[%c0_5, %c0_6] : memref<1x128xf32, #tpu.memory_space<vmem>>, vector<1x128xf32>
    %8 = vector.broadcast %7 : vector<1x128xf32> to vector<64x128xf32>
    %9 = arith.addf %6, %8 : vector<64x128xf32>
    %c0_7 = arith.constant 0 : index
    %c0_8 = arith.constant 0 : index
    %c0_9 = arith.constant 0 : index
    %10 = vector.load %arg5[%c0_7, %c0_8, %c0_9] : memref<1x64x128xf32, #tpu.memory_space<vmem>>, vector<1x64x128xf32>
    %11 = vector.shape_cast %10 : vector<1x64x128xf32> to vector<64x128xf32>
    %12 = vector.shape_cast %9 : vector<64x128xf32> to vector<1x64x128xf32>
    tpu.vector_store %arg5[%c0_7, %c0_8, %c0_9], %12 {strides = array<i32>} : memref<1x64x128xf32, #tpu.memory_space<vmem>>, vector<1x64x128xf32>,
    %c0_10 = arith.constant 0 : index
    %c0_11 = arith.constant 0 : index
    %c0_12 = arith.constant 0 : index
    %13 = vector.load %arg6[%c0_10, %c0_11, %c0_12] : memref<1x1x128xf32, #tpu.memory_space<vmem>>, vector<1x1x128xf32>
    %14 = vector.shape_cast %13 : vector<1x1x128xf32> to vector<1x128xf32>
    %cst_13 = arith.constant dense<0.000000e+00> : vector<128xf32>
    %15 = vector.multi_reduction <add>, %9, %cst_13 [0] : vector<64x128xf32> to vector<128xf32>
    %16 = vector.shape_cast %15 : vector<128xf32> to vector<1x128xf32>
    %17 = arith.addf %14, %16 : vector<1x128xf32>
    %c0_14 = arith.constant 0 : index
    %c0_15 = arith.constant 0 : index
    %c0_16 = arith.constant 0 : index
    %18 = vector.load %arg6[%c0_14, %c0_15, %c0_16] : memref<1x1x128xf32, #tpu.memory_space<vmem>>, vector<1x1x128xf32>
    %19 = vector.shape_cast %18 : vector<1x1x128xf32> to vector<1x128xf32>
    %20 = vector.shape_cast %17 : vector<1x128xf32> to vector<1x1x128xf32>
    tpu.vector_store %arg6[%c0_14, %c0_15, %c0_16], %20 {strides = array<i32>} : memref<1x1x128xf32, #tpu.memory_space<vmem>>, vector<1x1x128xf32>,
    %c0_17 = arith.constant 0 : index
    %c0_18 = arith.constant 0 : index
    %c0_19 = arith.constant 0 : index
    %21 = vector.load %arg7[%c0_17, %c0_18, %c0_19] : memref<1x1x128xf32, #tpu.memory_space<vmem>>, vector<1x1x128xf32>
    %22 = vector.shape_cast %21 : vector<1x1x128xf32> to vector<1x128xf32>
    %23 = arith.mulf %9, %9 : vector<64x128xf32>
    %cst_20 = arith.constant dense<0.000000e+00> : vector<128xf32>
    %24 = vector.multi_reduction <add>, %23, %cst_20 [0] : vector<64x128xf32> to vector<128xf32>
    %25 = vector.shape_cast %24 : vector<128xf32> to vector<1x128xf32>
    %26 = arith.addf %22, %25 : vector<1x128xf32>
    %c0_21 = arith.constant 0 : index
    %c0_22 = arith.constant 0 : index
    %c0_23 = arith.constant 0 : index
    %27 = vector.load %arg7[%c0_21, %c0_22, %c0_23] : memref<1x1x128xf32, #tpu.memory_space<vmem>>, vector<1x1x128xf32>
    %28 = vector.shape_cast %27 : vector<1x1x128xf32> to vector<1x128xf32>
    %29 = vector.shape_cast %26 : vector<1x128xf32> to vector<1x1x128xf32>
    tpu.vector_store %arg7[%c0_21, %c0_22, %c0_23], %29 {strides = array<i32>} : memref<1x1x128xf32, #tpu.memory_space<vmem>>, vector<1x1x128xf32>,
    return
  }
  func.func @transform_0(%arg0: i32, %arg1: i32) -> (i32, i32, i32) {
    %c0_i32 = arith.constant 0 : i32
    %c0_i32_0 = arith.constant 0 : i32
    return %arg0, %arg1, %c0_i32 : i32, i32, i32
  }
  func.func @transform_1(%arg0: i32, %arg1: i32) -> (i32, i32) {
    %c0_i32 = arith.constant 0 : i32
    %c0_i32_0 = arith.constant 0 : i32
    %c0_i32_1 = arith.constant 0 : i32
    return %c0_i32, %c0_i32_0 : i32, i32
  }
  func.func @transform_2(%arg0: i32, %arg1: i32) -> (i32, i32) {
    %c0_i32 = arith.constant 0 : i32
    %c0_i32_0 = arith.constant 0 : i32
    %c0_i32_1 = arith.constant 0 : i32
    return %c0_i32, %c0_i32_0 : i32, i32
  }
  func.func @transform_3(%arg0: i32, %arg1: i32) -> (i32, i32, i32) {
    %c0_i32 = arith.constant 0 : i32
    %c0_i32_0 = arith.constant 0 : i32
    return %arg0, %arg1, %c0_i32 : i32, i32, i32
  }
  func.func @transform_4(%arg0: i32, %arg1: i32) -> (i32, i32, i32) {
    %c0_i32 = arith.constant 0 : i32
    %c0_i32_0 = arith.constant 0 : i32
    %c0_i32_1 = arith.constant 0 : i32
    return %arg0, %c0_i32, %c0_i32_0 : i32, i32, i32
  }
  func.func @transform_5(%arg0: i32, %arg1: i32) -> (i32, i32, i32) {
    %c0_i32 = arith.constant 0 : i32
    %c0_i32_0 = arith.constant 0 : i32
    %c0_i32_1 = arith.constant 0 : i32
    return %arg0, %c0_i32, %c0_i32_0 : i32, i32, i32
  }
}

module attributes {stable_mosaic.version = 11 : i64} {
  func.func @_norm_act_kernel(%arg0: i32, %arg1: i32, %arg2: memref<1x64x128xf32, #tpu.memory_space<vmem>>, %arg3: memref<1x1x128xf32, #tpu.memory_space<vmem>>, %arg4: memref<1x1x128xf32, #tpu.memory_space<vmem>>, %arg5: memref<1x64x128xf32, #tpu.memory_space<vmem>>) attributes {dimension_semantics = [#tpu.dimension_semantics<parallel>, #tpu.dimension_semantics<parallel>], iteration_bounds = array<i64: 2, 1>, scalar_prefetch = 0 : i64, scratch_operands = 0 : i64, tpu.core_type = #tpu.core_type<tc>, window_params = [{transform_indices = @transform_0, window_bounds = array<i64: 1, 64, 128>}, {transform_indices = @transform_1, window_bounds = array<i64: 1, 1, 128>}, {transform_indices = @transform_2, window_bounds = array<i64: 1, 1, 128>}, {transform_indices = @transform_3, window_bounds = array<i64: 1, 64, 128>}]} {
    %c0 = arith.constant 0 : index
    %c0_0 = arith.constant 0 : index
    %c0_1 = arith.constant 0 : index
    %0 = vector.load %arg2[%c0, %c0_0, %c0_1] : memref<1x64x128xf32, #tpu.memory_space<vmem>>, vector<1x64x128xf32>
    %1 = vector.shape_cast %0 : vector<1x64x128xf32> to vector<64x128xf32>
    %c0_2 = arith.constant 0 : index
    %c0_3 = arith.constant 0 : index
    %c0_4 = arith.constant 0 : index
    %2 = vector.load %arg3[%c0_2, %c0_3, %c0_4] : memref<1x1x128xf32, #tpu.memory_space<vmem>>, vector<1x1x128xf32>
    %3 = vector.shape_cast %2 : vector<1x1x128xf32> to vector<1x128xf32>
    %cst = arith.constant 1.562500e-02 : f32
    %4 = vector.broadcast %cst : f32 to vector<1x128xf32>
    %5 = arith.mulf %3, %4 : vector<1x128xf32>
    %c0_5 = arith.constant 0 : index
    %c0_6 = arith.constant 0 : index
    %c0_7 = arith.constant 0 : index
    %6 = vector.load %arg4[%c0_5, %c0_6, %c0_7] : memref<1x1x128xf32, #tpu.memory_space<vmem>>, vector<1x1x128xf32>
    %7 = vector.shape_cast %6 : vector<1x1x128xf32> to vector<1x128xf32>
    %cst_8 = arith.constant 1.562500e-02 : f32
    %8 = vector.broadcast %cst_8 : f32 to vector<1x128xf32>
    %9 = arith.mulf %7, %8 : vector<1x128xf32>
    %10 = arith.mulf %5, %5 : vector<1x128xf32>
    %11 = arith.subf %9, %10 : vector<1x128xf32>
    %cst_9 = arith.constant 0.000000e+00 : f32
    %12 = vector.broadcast %cst_9 : f32 to vector<1x128xf32>
    %13 = arith.maximumf %11, %12 : vector<1x128xf32>
    %14 = vector.broadcast %5 : vector<1x128xf32> to vector<64x128xf32>
    %15 = arith.subf %1, %14 : vector<64x128xf32>
    %cst_10 = arith.constant 9.99999974E-6 : f32
    %16 = vector.broadcast %cst_10 : f32 to vector<1x128xf32>
    %17 = arith.addf %13, %16 : vector<1x128xf32>
    %18 = math.rsqrt %17 : vector<1x128xf32>
    %19 = vector.broadcast %18 : vector<1x128xf32> to vector<64x128xf32>
    %20 = arith.mulf %15, %19 : vector<64x128xf32>
    %cst_11 = arith.constant 0.000000e+00 : f32
    %21 = vector.broadcast %cst_11 : f32 to vector<64x128xf32>
    %22 = arith.cmpf ogt, %20, %21 : vector<64x128xf32>
    %cst_12 = arith.constant 2.000000e-01 : f32
    %23 = vector.broadcast %cst_12 : f32 to vector<64x128xf32>
    %24 = arith.mulf %23, %20 : vector<64x128xf32>
    %25 = arith.select %22, %20, %24 : vector<64x128xi1>, vector<64x128xf32>
    %c0_13 = arith.constant 0 : index
    %c0_14 = arith.constant 0 : index
    %c0_15 = arith.constant 0 : index
    %26 = vector.load %arg5[%c0_13, %c0_14, %c0_15] : memref<1x64x128xf32, #tpu.memory_space<vmem>>, vector<1x64x128xf32>
    %27 = vector.shape_cast %26 : vector<1x64x128xf32> to vector<64x128xf32>
    %28 = vector.shape_cast %25 : vector<64x128xf32> to vector<1x64x128xf32>
    tpu.vector_store %arg5[%c0_13, %c0_14, %c0_15], %28 {strides = array<i32>} : memref<1x64x128xf32, #tpu.memory_space<vmem>>, vector<1x64x128xf32>,
    return
  }
  func.func @transform_0(%arg0: i32, %arg1: i32) -> (i32, i32, i32) {
    %c0_i32 = arith.constant 0 : i32
    %c0_i32_0 = arith.constant 0 : i32
    return %arg0, %arg1, %c0_i32 : i32, i32, i32
  }
  func.func @transform_1(%arg0: i32, %arg1: i32) -> (i32, i32, i32) {
    %c0_i32 = arith.constant 0 : i32
    %c0_i32_0 = arith.constant 0 : i32
    %c0_i32_1 = arith.constant 0 : i32
    return %arg0, %c0_i32, %c0_i32_0 : i32, i32, i32
  }
  func.func @transform_2(%arg0: i32, %arg1: i32) -> (i32, i32, i32) {
    %c0_i32 = arith.constant 0 : i32
    %c0_i32_0 = arith.constant 0 : i32
    %c0_i32_1 = arith.constant 0 : i32
    return %arg0, %c0_i32, %c0_i32_0 : i32, i32, i32
  }
  func.func @transform_3(%arg0: i32, %arg1: i32) -> (i32, i32, i32) {
    %c0_i32 = arith.constant 0 : i32
    %c0_i32_0 = arith.constant 0 : i32
    return %arg0, %arg1, %c0_i32 : i32, i32, i32
  }
}

module attributes {stable_mosaic.version = 11 : i64} {
  func.func @_conv_stats_kernel(%arg0: i32, %arg1: i32, %arg2: memref<1x16x256xbf16, #tpu.memory_space<vmem>>, %arg3: memref<256x128xbf16, #tpu.memory_space<vmem>>, %arg4: memref<1x128xf32, #tpu.memory_space<vmem>>, %arg5: memref<1x16x128xf32, #tpu.memory_space<vmem>>, %arg6: memref<1x1x128xf32, #tpu.memory_space<vmem>>, %arg7: memref<1x1x128xf32, #tpu.memory_space<vmem>>) attributes {dimension_semantics = [#tpu.dimension_semantics<parallel>, #tpu.dimension_semantics<arbitrary>], iteration_bounds = array<i64: 2, 1>, scalar_prefetch = 0 : i64, scratch_operands = 0 : i64, tpu.core_type = #tpu.core_type<tc>, window_params = [{transform_indices = @transform_0, window_bounds = array<i64: 1, 16, 256>}, {pipeline_mode = #tpu.pipeline_mode<synchronous>, transform_indices = @transform_1, window_bounds = array<i64: 256, 128>}, {pipeline_mode = #tpu.pipeline_mode<synchronous>, transform_indices = @transform_2, window_bounds = array<i64: 1, 128>}, {transform_indices = @transform_3, window_bounds = array<i64: 1, 16, 128>}, {transform_indices = @transform_4, window_bounds = array<i64: 1, 1, 128>}, {transform_indices = @transform_5, window_bounds = array<i64: 1, 1, 128>}]} {
    %c0_i32 = arith.constant 0 : i32
    %0 = arith.cmpi eq, %arg1, %c0_i32 : i32
    %1 = arith.extui %0 : i1 to i32
    %c0_i32_0 = arith.constant 0 : i32
    %2 = arith.cmpi ne, %1, %c0_i32_0 : i32
    scf.if %2 {
      %cst_24 = arith.constant 0.000000e+00 : f32
      %30 = vector.broadcast %cst_24 : f32 to vector<1x1x128xf32>
      %c0_25 = arith.constant 0 : index
      %c0_26 = arith.constant 0 : index
      %c0_27 = arith.constant 0 : index
      %31 = vector.load %arg6[%c0_25, %c0_26, %c0_27] : memref<1x1x128xf32, #tpu.memory_space<vmem>>, vector<1x1x128xf32>
      tpu.vector_store %arg6[%c0_25, %c0_26, %c0_27], %30 {strides = array<i32>} : memref<1x1x128xf32, #tpu.memory_space<vmem>>, vector<1x1x128xf32>,
      %cst_28 = arith.constant 0.000000e+00 : f32
      %32 = vector.broadcast %cst_28 : f32 to vector<1x1x128xf32>
      %c0_29 = arith.constant 0 : index
      %c0_30 = arith.constant 0 : index
      %c0_31 = arith.constant 0 : index
      %33 = vector.load %arg7[%c0_29, %c0_30, %c0_31] : memref<1x1x128xf32, #tpu.memory_space<vmem>>, vector<1x1x128xf32>
      tpu.vector_store %arg7[%c0_29, %c0_30, %c0_31], %32 {strides = array<i32>} : memref<1x1x128xf32, #tpu.memory_space<vmem>>, vector<1x1x128xf32>,
    } else {
    }
    %c0 = arith.constant 0 : index
    %c0_1 = arith.constant 0 : index
    %c0_2 = arith.constant 0 : index
    %3 = vector.load %arg2[%c0, %c0_1, %c0_2] : memref<1x16x256xbf16, #tpu.memory_space<vmem>>, vector<1x16x256xbf16>
    %4 = vector.shape_cast %3 : vector<1x16x256xbf16> to vector<16x256xbf16>
    %c0_3 = arith.constant 0 : index
    %c0_4 = arith.constant 0 : index
    %5 = vector.load %arg3[%c0_3, %c0_4] : memref<256x128xbf16, #tpu.memory_space<vmem>>, vector<256x128xbf16>
    %cst = arith.constant dense<0.000000e+00> : vector<16x128xf32>
    %6 = tpu.matmul %4, %5, %cst {dimension_numbers = #tpu.dot_dimension_numbers<[1], [0], [0], [1], [0, 0, 1, 1], [], []>} : vector<16x256xbf16>, vector<256x128xbf16>, vector<16x128xf32> -> vector<16x128xf32>
    %c0_5 = arith.constant 0 : index
    %c0_6 = arith.constant 0 : index
    %7 = vector.load %arg4[%c0_5, %c0_6] : memref<1x128xf32, #tpu.memory_space<vmem>>, vector<1x128xf32>
    %8 = vector.broadcast %7 : vector<1x128xf32> to vector<16x128xf32>
    %9 = arith.addf %6, %8 : vector<16x128xf32>
    %c0_7 = arith.constant 0 : index
    %c0_8 = arith.constant 0 : index
    %c0_9 = arith.constant 0 : index
    %10 = vector.load %arg5[%c0_7, %c0_8, %c0_9] : memref<1x16x128xf32, #tpu.memory_space<vmem>>, vector<1x16x128xf32>
    %11 = vector.shape_cast %10 : vector<1x16x128xf32> to vector<16x128xf32>
    %12 = vector.shape_cast %9 : vector<16x128xf32> to vector<1x16x128xf32>
    tpu.vector_store %arg5[%c0_7, %c0_8, %c0_9], %12 {strides = array<i32>} : memref<1x16x128xf32, #tpu.memory_space<vmem>>, vector<1x16x128xf32>,
    %c0_10 = arith.constant 0 : index
    %c0_11 = arith.constant 0 : index
    %c0_12 = arith.constant 0 : index
    %13 = vector.load %arg6[%c0_10, %c0_11, %c0_12] : memref<1x1x128xf32, #tpu.memory_space<vmem>>, vector<1x1x128xf32>
    %14 = vector.shape_cast %13 : vector<1x1x128xf32> to vector<1x128xf32>
    %cst_13 = arith.constant dense<0.000000e+00> : vector<128xf32>
    %15 = vector.multi_reduction <add>, %9, %cst_13 [0] : vector<16x128xf32> to vector<128xf32>
    %16 = vector.shape_cast %15 : vector<128xf32> to vector<1x128xf32>
    %17 = arith.addf %14, %16 : vector<1x128xf32>
    %c0_14 = arith.constant 0 : index
    %c0_15 = arith.constant 0 : index
    %c0_16 = arith.constant 0 : index
    %18 = vector.load %arg6[%c0_14, %c0_15, %c0_16] : memref<1x1x128xf32, #tpu.memory_space<vmem>>, vector<1x1x128xf32>
    %19 = vector.shape_cast %18 : vector<1x1x128xf32> to vector<1x128xf32>
    %20 = vector.shape_cast %17 : vector<1x128xf32> to vector<1x1x128xf32>
    tpu.vector_store %arg6[%c0_14, %c0_15, %c0_16], %20 {strides = array<i32>} : memref<1x1x128xf32, #tpu.memory_space<vmem>>, vector<1x1x128xf32>,
    %c0_17 = arith.constant 0 : index
    %c0_18 = arith.constant 0 : index
    %c0_19 = arith.constant 0 : index
    %21 = vector.load %arg7[%c0_17, %c0_18, %c0_19] : memref<1x1x128xf32, #tpu.memory_space<vmem>>, vector<1x1x128xf32>
    %22 = vector.shape_cast %21 : vector<1x1x128xf32> to vector<1x128xf32>
    %23 = arith.mulf %9, %9 : vector<16x128xf32>
    %cst_20 = arith.constant dense<0.000000e+00> : vector<128xf32>
    %24 = vector.multi_reduction <add>, %23, %cst_20 [0] : vector<16x128xf32> to vector<128xf32>
    %25 = vector.shape_cast %24 : vector<128xf32> to vector<1x128xf32>
    %26 = arith.addf %22, %25 : vector<1x128xf32>
    %c0_21 = arith.constant 0 : index
    %c0_22 = arith.constant 0 : index
    %c0_23 = arith.constant 0 : index
    %27 = vector.load %arg7[%c0_21, %c0_22, %c0_23] : memref<1x1x128xf32, #tpu.memory_space<vmem>>, vector<1x1x128xf32>
    %28 = vector.shape_cast %27 : vector<1x1x128xf32> to vector<1x128xf32>
    %29 = vector.shape_cast %26 : vector<1x128xf32> to vector<1x1x128xf32>
    tpu.vector_store %arg7[%c0_21, %c0_22, %c0_23], %29 {strides = array<i32>} : memref<1x1x128xf32, #tpu.memory_space<vmem>>, vector<1x1x128xf32>,
    return
  }
  func.func @transform_0(%arg0: i32, %arg1: i32) -> (i32, i32, i32) {
    %c0_i32 = arith.constant 0 : i32
    %c0_i32_0 = arith.constant 0 : i32
    return %arg0, %arg1, %c0_i32 : i32, i32, i32
  }
  func.func @transform_1(%arg0: i32, %arg1: i32) -> (i32, i32) {
    %c0_i32 = arith.constant 0 : i32
    %c0_i32_0 = arith.constant 0 : i32
    %c0_i32_1 = arith.constant 0 : i32
    return %c0_i32, %c0_i32_0 : i32, i32
  }
  func.func @transform_2(%arg0: i32, %arg1: i32) -> (i32, i32) {
    %c0_i32 = arith.constant 0 : i32
    %c0_i32_0 = arith.constant 0 : i32
    %c0_i32_1 = arith.constant 0 : i32
    return %c0_i32, %c0_i32_0 : i32, i32
  }
  func.func @transform_3(%arg0: i32, %arg1: i32) -> (i32, i32, i32) {
    %c0_i32 = arith.constant 0 : i32
    %c0_i32_0 = arith.constant 0 : i32
    return %arg0, %arg1, %c0_i32 : i32, i32, i32
  }
  func.func @transform_4(%arg0: i32, %arg1: i32) -> (i32, i32, i32) {
    %c0_i32 = arith.constant 0 : i32
    %c0_i32_0 = arith.constant 0 : i32
    %c0_i32_1 = arith.constant 0 : i32
    return %arg0, %c0_i32, %c0_i32_0 : i32, i32, i32
  }
  func.func @transform_5(%arg0: i32, %arg1: i32) -> (i32, i32, i32) {
    %c0_i32 = arith.constant 0 : i32
    %c0_i32_0 = arith.constant 0 : i32
    %c0_i32_1 = arith.constant 0 : i32
    return %arg0, %c0_i32, %c0_i32_0 : i32, i32, i32
  }
}

module attributes {stable_mosaic.version = 11 : i64} {
  func.func @_norm_act_kernel(%arg0: i32, %arg1: i32, %arg2: memref<1x16x128xf32, #tpu.memory_space<vmem>>, %arg3: memref<1x1x128xf32, #tpu.memory_space<vmem>>, %arg4: memref<1x1x128xf32, #tpu.memory_space<vmem>>, %arg5: memref<1x16x128xf32, #tpu.memory_space<vmem>>) attributes {dimension_semantics = [#tpu.dimension_semantics<parallel>, #tpu.dimension_semantics<parallel>], iteration_bounds = array<i64: 2, 1>, scalar_prefetch = 0 : i64, scratch_operands = 0 : i64, tpu.core_type = #tpu.core_type<tc>, window_params = [{transform_indices = @transform_0, window_bounds = array<i64: 1, 16, 128>}, {transform_indices = @transform_1, window_bounds = array<i64: 1, 1, 128>}, {transform_indices = @transform_2, window_bounds = array<i64: 1, 1, 128>}, {transform_indices = @transform_3, window_bounds = array<i64: 1, 16, 128>}]} {
    %c0 = arith.constant 0 : index
    %c0_0 = arith.constant 0 : index
    %c0_1 = arith.constant 0 : index
    %0 = vector.load %arg2[%c0, %c0_0, %c0_1] : memref<1x16x128xf32, #tpu.memory_space<vmem>>, vector<1x16x128xf32>
    %1 = vector.shape_cast %0 : vector<1x16x128xf32> to vector<16x128xf32>
    %c0_2 = arith.constant 0 : index
    %c0_3 = arith.constant 0 : index
    %c0_4 = arith.constant 0 : index
    %2 = vector.load %arg3[%c0_2, %c0_3, %c0_4] : memref<1x1x128xf32, #tpu.memory_space<vmem>>, vector<1x1x128xf32>
    %3 = vector.shape_cast %2 : vector<1x1x128xf32> to vector<1x128xf32>
    %cst = arith.constant 6.250000e-02 : f32
    %4 = vector.broadcast %cst : f32 to vector<1x128xf32>
    %5 = arith.mulf %3, %4 : vector<1x128xf32>
    %c0_5 = arith.constant 0 : index
    %c0_6 = arith.constant 0 : index
    %c0_7 = arith.constant 0 : index
    %6 = vector.load %arg4[%c0_5, %c0_6, %c0_7] : memref<1x1x128xf32, #tpu.memory_space<vmem>>, vector<1x1x128xf32>
    %7 = vector.shape_cast %6 : vector<1x1x128xf32> to vector<1x128xf32>
    %cst_8 = arith.constant 6.250000e-02 : f32
    %8 = vector.broadcast %cst_8 : f32 to vector<1x128xf32>
    %9 = arith.mulf %7, %8 : vector<1x128xf32>
    %10 = arith.mulf %5, %5 : vector<1x128xf32>
    %11 = arith.subf %9, %10 : vector<1x128xf32>
    %cst_9 = arith.constant 0.000000e+00 : f32
    %12 = vector.broadcast %cst_9 : f32 to vector<1x128xf32>
    %13 = arith.maximumf %11, %12 : vector<1x128xf32>
    %14 = vector.broadcast %5 : vector<1x128xf32> to vector<16x128xf32>
    %15 = arith.subf %1, %14 : vector<16x128xf32>
    %cst_10 = arith.constant 9.99999974E-6 : f32
    %16 = vector.broadcast %cst_10 : f32 to vector<1x128xf32>
    %17 = arith.addf %13, %16 : vector<1x128xf32>
    %18 = math.rsqrt %17 : vector<1x128xf32>
    %19 = vector.broadcast %18 : vector<1x128xf32> to vector<16x128xf32>
    %20 = arith.mulf %15, %19 : vector<16x128xf32>
    %cst_11 = arith.constant 0.000000e+00 : f32
    %21 = vector.broadcast %cst_11 : f32 to vector<16x128xf32>
    %22 = arith.cmpf ogt, %20, %21 : vector<16x128xf32>
    %cst_12 = arith.constant 2.000000e-01 : f32
    %23 = vector.broadcast %cst_12 : f32 to vector<16x128xf32>
    %24 = arith.mulf %23, %20 : vector<16x128xf32>
    %25 = arith.select %22, %20, %24 : vector<16x128xi1>, vector<16x128xf32>
    %c0_13 = arith.constant 0 : index
    %c0_14 = arith.constant 0 : index
    %c0_15 = arith.constant 0 : index
    %26 = vector.load %arg5[%c0_13, %c0_14, %c0_15] : memref<1x16x128xf32, #tpu.memory_space<vmem>>, vector<1x16x128xf32>
    %27 = vector.shape_cast %26 : vector<1x16x128xf32> to vector<16x128xf32>
    %28 = vector.shape_cast %25 : vector<16x128xf32> to vector<1x16x128xf32>
    tpu.vector_store %arg5[%c0_13, %c0_14, %c0_15], %28 {strides = array<i32>} : memref<1x16x128xf32, #tpu.memory_space<vmem>>, vector<1x16x128xf32>,
    return
  }
  func.func @transform_0(%arg0: i32, %arg1: i32) -> (i32, i32, i32) {
    %c0_i32 = arith.constant 0 : i32
    %c0_i32_0 = arith.constant 0 : i32
    return %arg0, %arg1, %c0_i32 : i32, i32, i32
  }
  func.func @transform_1(%arg0: i32, %arg1: i32) -> (i32, i32, i32) {
    %c0_i32 = arith.constant 0 : i32
    %c0_i32_0 = arith.constant 0 : i32
    %c0_i32_1 = arith.constant 0 : i32
    return %arg0, %c0_i32, %c0_i32_0 : i32, i32, i32
  }
  func.func @transform_2(%arg0: i32, %arg1: i32) -> (i32, i32, i32) {
    %c0_i32 = arith.constant 0 : i32
    %c0_i32_0 = arith.constant 0 : i32
    %c0_i32_1 = arith.constant 0 : i32
    return %arg0, %c0_i32, %c0_i32_0 : i32, i32, i32
  }
  func.func @transform_3(%arg0: i32, %arg1: i32) -> (i32, i32, i32) {
    %c0_i32 = arith.constant 0 : i32
    %c0_i32_0 = arith.constant 0 : i32
    return %arg0, %arg1, %c0_i32 : i32, i32, i32
  }
}

module attributes {stable_mosaic.version = 11 : i64} {
  func.func @_norm_act_kernel(%arg0: i32, %arg1: i32, %arg2: memref<1x9x128xf32, #tpu.memory_space<vmem>>, %arg3: memref<1x1x128xf32, #tpu.memory_space<vmem>>, %arg4: memref<1x1x128xf32, #tpu.memory_space<vmem>>, %arg5: memref<1x9x128xf32, #tpu.memory_space<vmem>>) attributes {dimension_semantics = [#tpu.dimension_semantics<parallel>, #tpu.dimension_semantics<parallel>], iteration_bounds = array<i64: 2, 1>, scalar_prefetch = 0 : i64, scratch_operands = 0 : i64, tpu.core_type = #tpu.core_type<tc>, window_params = [{transform_indices = @transform_0, window_bounds = array<i64: 1, 9, 128>}, {transform_indices = @transform_1, window_bounds = array<i64: 1, 1, 128>}, {transform_indices = @transform_2, window_bounds = array<i64: 1, 1, 128>}, {transform_indices = @transform_3, window_bounds = array<i64: 1, 9, 128>}]} {
    %c0 = arith.constant 0 : index
    %c0_0 = arith.constant 0 : index
    %c0_1 = arith.constant 0 : index
    %0 = vector.load %arg2[%c0, %c0_0, %c0_1] : memref<1x9x128xf32, #tpu.memory_space<vmem>>, vector<1x9x128xf32>
    %1 = vector.shape_cast %0 : vector<1x9x128xf32> to vector<9x128xf32>
    %c0_2 = arith.constant 0 : index
    %c0_3 = arith.constant 0 : index
    %c0_4 = arith.constant 0 : index
    %2 = vector.load %arg3[%c0_2, %c0_3, %c0_4] : memref<1x1x128xf32, #tpu.memory_space<vmem>>, vector<1x1x128xf32>
    %3 = vector.shape_cast %2 : vector<1x1x128xf32> to vector<1x128xf32>
    %cst = arith.constant 0.111111112 : f32
    %4 = vector.broadcast %cst : f32 to vector<1x128xf32>
    %5 = arith.mulf %3, %4 : vector<1x128xf32>
    %c0_5 = arith.constant 0 : index
    %c0_6 = arith.constant 0 : index
    %c0_7 = arith.constant 0 : index
    %6 = vector.load %arg4[%c0_5, %c0_6, %c0_7] : memref<1x1x128xf32, #tpu.memory_space<vmem>>, vector<1x1x128xf32>
    %7 = vector.shape_cast %6 : vector<1x1x128xf32> to vector<1x128xf32>
    %cst_8 = arith.constant 0.111111112 : f32
    %8 = vector.broadcast %cst_8 : f32 to vector<1x128xf32>
    %9 = arith.mulf %7, %8 : vector<1x128xf32>
    %10 = arith.mulf %5, %5 : vector<1x128xf32>
    %11 = arith.subf %9, %10 : vector<1x128xf32>
    %cst_9 = arith.constant 0.000000e+00 : f32
    %12 = vector.broadcast %cst_9 : f32 to vector<1x128xf32>
    %13 = arith.maximumf %11, %12 : vector<1x128xf32>
    %14 = vector.broadcast %5 : vector<1x128xf32> to vector<9x128xf32>
    %15 = arith.subf %1, %14 : vector<9x128xf32>
    %cst_10 = arith.constant 9.99999974E-6 : f32
    %16 = vector.broadcast %cst_10 : f32 to vector<1x128xf32>
    %17 = arith.addf %13, %16 : vector<1x128xf32>
    %18 = math.rsqrt %17 : vector<1x128xf32>
    %19 = vector.broadcast %18 : vector<1x128xf32> to vector<9x128xf32>
    %20 = arith.mulf %15, %19 : vector<9x128xf32>
    %cst_11 = arith.constant 0.000000e+00 : f32
    %21 = vector.broadcast %cst_11 : f32 to vector<9x128xf32>
    %22 = arith.cmpf ogt, %20, %21 : vector<9x128xf32>
    %cst_12 = arith.constant 2.000000e-01 : f32
    %23 = vector.broadcast %cst_12 : f32 to vector<9x128xf32>
    %24 = arith.mulf %23, %20 : vector<9x128xf32>
    %25 = arith.select %22, %20, %24 : vector<9x128xi1>, vector<9x128xf32>
    %c0_13 = arith.constant 0 : index
    %c0_14 = arith.constant 0 : index
    %c0_15 = arith.constant 0 : index
    %26 = vector.load %arg5[%c0_13, %c0_14, %c0_15] : memref<1x9x128xf32, #tpu.memory_space<vmem>>, vector<1x9x128xf32>
    %27 = vector.shape_cast %26 : vector<1x9x128xf32> to vector<9x128xf32>
    %28 = vector.shape_cast %25 : vector<9x128xf32> to vector<1x9x128xf32>
    tpu.vector_store %arg5[%c0_13, %c0_14, %c0_15], %28 {strides = array<i32>} : memref<1x9x128xf32, #tpu.memory_space<vmem>>, vector<1x9x128xf32>,
    return
  }
  func.func @transform_0(%arg0: i32, %arg1: i32) -> (i32, i32, i32) {
    %c0_i32 = arith.constant 0 : i32
    %c0_i32_0 = arith.constant 0 : i32
    return %arg0, %arg1, %c0_i32 : i32, i32, i32
  }
  func.func @transform_1(%arg0: i32, %arg1: i32) -> (i32, i32, i32) {
    %c0_i32 = arith.constant 0 : i32
    %c0_i32_0 = arith.constant 0 : i32
    %c0_i32_1 = arith.constant 0 : i32
    return %arg0, %c0_i32, %c0_i32_0 : i32, i32, i32
  }
  func.func @transform_2(%arg0: i32, %arg1: i32) -> (i32, i32, i32) {
    %c0_i32 = arith.constant 0 : i32
    %c0_i32_0 = arith.constant 0 : i32
    %c0_i32_1 = arith.constant 0 : i32
    return %arg0, %c0_i32, %c0_i32_0 : i32, i32, i32
  }
  func.func @transform_3(%arg0: i32, %arg1: i32) -> (i32, i32, i32) {
    %c0_i32 = arith.constant 0 : i32
    %c0_i32_0 = arith.constant 0 : i32
    return %arg0, %arg1, %c0_i32 : i32, i32, i32
  }
}

module attributes {stable_mosaic.version = 11 : i64} {
  func.func @_conv_stats_kernel(%arg0: i32, %arg1: i32, %arg2: memref<1x9x512xbf16, #tpu.memory_space<vmem>>, %arg3: memref<512x128xbf16, #tpu.memory_space<vmem>>, %arg4: memref<1x128xf32, #tpu.memory_space<vmem>>, %arg5: memref<1x9x128xf32, #tpu.memory_space<vmem>>, %arg6: memref<1x1x128xf32, #tpu.memory_space<vmem>>, %arg7: memref<1x1x128xf32, #tpu.memory_space<vmem>>) attributes {dimension_semantics = [#tpu.dimension_semantics<parallel>, #tpu.dimension_semantics<arbitrary>], iteration_bounds = array<i64: 2, 1>, scalar_prefetch = 0 : i64, scratch_operands = 0 : i64, tpu.core_type = #tpu.core_type<tc>, window_params = [{transform_indices = @transform_0, window_bounds = array<i64: 1, 9, 512>}, {pipeline_mode = #tpu.pipeline_mode<synchronous>, transform_indices = @transform_1, window_bounds = array<i64: 512, 128>}, {pipeline_mode = #tpu.pipeline_mode<synchronous>, transform_indices = @transform_2, window_bounds = array<i64: 1, 128>}, {transform_indices = @transform_3, window_bounds = array<i64: 1, 9, 128>}, {transform_indices = @transform_4, window_bounds = array<i64: 1, 1, 128>}, {transform_indices = @transform_5, window_bounds = array<i64: 1, 1, 128>}]} {
    %c0_i32 = arith.constant 0 : i32
    %0 = arith.cmpi eq, %arg1, %c0_i32 : i32
    %1 = arith.extui %0 : i1 to i32
    %c0_i32_0 = arith.constant 0 : i32
    %2 = arith.cmpi ne, %1, %c0_i32_0 : i32
    scf.if %2 {
      %cst_24 = arith.constant 0.000000e+00 : f32
      %30 = vector.broadcast %cst_24 : f32 to vector<1x1x128xf32>
      %c0_25 = arith.constant 0 : index
      %c0_26 = arith.constant 0 : index
      %c0_27 = arith.constant 0 : index
      %31 = vector.load %arg6[%c0_25, %c0_26, %c0_27] : memref<1x1x128xf32, #tpu.memory_space<vmem>>, vector<1x1x128xf32>
      tpu.vector_store %arg6[%c0_25, %c0_26, %c0_27], %30 {strides = array<i32>} : memref<1x1x128xf32, #tpu.memory_space<vmem>>, vector<1x1x128xf32>,
      %cst_28 = arith.constant 0.000000e+00 : f32
      %32 = vector.broadcast %cst_28 : f32 to vector<1x1x128xf32>
      %c0_29 = arith.constant 0 : index
      %c0_30 = arith.constant 0 : index
      %c0_31 = arith.constant 0 : index
      %33 = vector.load %arg7[%c0_29, %c0_30, %c0_31] : memref<1x1x128xf32, #tpu.memory_space<vmem>>, vector<1x1x128xf32>
      tpu.vector_store %arg7[%c0_29, %c0_30, %c0_31], %32 {strides = array<i32>} : memref<1x1x128xf32, #tpu.memory_space<vmem>>, vector<1x1x128xf32>,
    } else {
    }
    %c0 = arith.constant 0 : index
    %c0_1 = arith.constant 0 : index
    %c0_2 = arith.constant 0 : index
    %3 = vector.load %arg2[%c0, %c0_1, %c0_2] : memref<1x9x512xbf16, #tpu.memory_space<vmem>>, vector<1x9x512xbf16>
    %4 = vector.shape_cast %3 : vector<1x9x512xbf16> to vector<9x512xbf16>
    %c0_3 = arith.constant 0 : index
    %c0_4 = arith.constant 0 : index
    %5 = vector.load %arg3[%c0_3, %c0_4] : memref<512x128xbf16, #tpu.memory_space<vmem>>, vector<512x128xbf16>
    %cst = arith.constant dense<0.000000e+00> : vector<9x128xf32>
    %6 = tpu.matmul %4, %5, %cst {dimension_numbers = #tpu.dot_dimension_numbers<[1], [0], [0], [1], [0, 0, 1, 1], [], []>} : vector<9x512xbf16>, vector<512x128xbf16>, vector<9x128xf32> -> vector<9x128xf32>
    %c0_5 = arith.constant 0 : index
    %c0_6 = arith.constant 0 : index
    %7 = vector.load %arg4[%c0_5, %c0_6] : memref<1x128xf32, #tpu.memory_space<vmem>>, vector<1x128xf32>
    %8 = vector.broadcast %7 : vector<1x128xf32> to vector<9x128xf32>
    %9 = arith.addf %6, %8 : vector<9x128xf32>
    %c0_7 = arith.constant 0 : index
    %c0_8 = arith.constant 0 : index
    %c0_9 = arith.constant 0 : index
    %10 = vector.load %arg5[%c0_7, %c0_8, %c0_9] : memref<1x9x128xf32, #tpu.memory_space<vmem>>, vector<1x9x128xf32>
    %11 = vector.shape_cast %10 : vector<1x9x128xf32> to vector<9x128xf32>
    %12 = vector.shape_cast %9 : vector<9x128xf32> to vector<1x9x128xf32>
    tpu.vector_store %arg5[%c0_7, %c0_8, %c0_9], %12 {strides = array<i32>} : memref<1x9x128xf32, #tpu.memory_space<vmem>>, vector<1x9x128xf32>,
    %c0_10 = arith.constant 0 : index
    %c0_11 = arith.constant 0 : index
    %c0_12 = arith.constant 0 : index
    %13 = vector.load %arg6[%c0_10, %c0_11, %c0_12] : memref<1x1x128xf32, #tpu.memory_space<vmem>>, vector<1x1x128xf32>
    %14 = vector.shape_cast %13 : vector<1x1x128xf32> to vector<1x128xf32>
    %cst_13 = arith.constant dense<0.000000e+00> : vector<128xf32>
    %15 = vector.multi_reduction <add>, %9, %cst_13 [0] : vector<9x128xf32> to vector<128xf32>
    %16 = vector.shape_cast %15 : vector<128xf32> to vector<1x128xf32>
    %17 = arith.addf %14, %16 : vector<1x128xf32>
    %c0_14 = arith.constant 0 : index
    %c0_15 = arith.constant 0 : index
    %c0_16 = arith.constant 0 : index
    %18 = vector.load %arg6[%c0_14, %c0_15, %c0_16] : memref<1x1x128xf32, #tpu.memory_space<vmem>>, vector<1x1x128xf32>
    %19 = vector.shape_cast %18 : vector<1x1x128xf32> to vector<1x128xf32>
    %20 = vector.shape_cast %17 : vector<1x128xf32> to vector<1x1x128xf32>
    tpu.vector_store %arg6[%c0_14, %c0_15, %c0_16], %20 {strides = array<i32>} : memref<1x1x128xf32, #tpu.memory_space<vmem>>, vector<1x1x128xf32>,
    %c0_17 = arith.constant 0 : index
    %c0_18 = arith.constant 0 : index
    %c0_19 = arith.constant 0 : index
    %21 = vector.load %arg7[%c0_17, %c0_18, %c0_19] : memref<1x1x128xf32, #tpu.memory_space<vmem>>, vector<1x1x128xf32>
    %22 = vector.shape_cast %21 : vector<1x1x128xf32> to vector<1x128xf32>
    %23 = arith.mulf %9, %9 : vector<9x128xf32>
    %cst_20 = arith.constant dense<0.000000e+00> : vector<128xf32>
    %24 = vector.multi_reduction <add>, %23, %cst_20 [0] : vector<9x128xf32> to vector<128xf32>
    %25 = vector.shape_cast %24 : vector<128xf32> to vector<1x128xf32>
    %26 = arith.addf %22, %25 : vector<1x128xf32>
    %c0_21 = arith.constant 0 : index
    %c0_22 = arith.constant 0 : index
    %c0_23 = arith.constant 0 : index
    %27 = vector.load %arg7[%c0_21, %c0_22, %c0_23] : memref<1x1x128xf32, #tpu.memory_space<vmem>>, vector<1x1x128xf32>
    %28 = vector.shape_cast %27 : vector<1x1x128xf32> to vector<1x128xf32>
    %29 = vector.shape_cast %26 : vector<1x128xf32> to vector<1x1x128xf32>
    tpu.vector_store %arg7[%c0_21, %c0_22, %c0_23], %29 {strides = array<i32>} : memref<1x1x128xf32, #tpu.memory_space<vmem>>, vector<1x1x128xf32>,
    return
  }
  func.func @transform_0(%arg0: i32, %arg1: i32) -> (i32, i32, i32) {
    %c0_i32 = arith.constant 0 : i32
    %c0_i32_0 = arith.constant 0 : i32
    return %arg0, %arg1, %c0_i32 : i32, i32, i32
  }
  func.func @transform_1(%arg0: i32, %arg1: i32) -> (i32, i32) {
    %c0_i32 = arith.constant 0 : i32
    %c0_i32_0 = arith.constant 0 : i32
    %c0_i32_1 = arith.constant 0 : i32
    return %c0_i32, %c0_i32_0 : i32, i32
  }
  func.func @transform_2(%arg0: i32, %arg1: i32) -> (i32, i32) {
    %c0_i32 = arith.constant 0 : i32
    %c0_i32_0 = arith.constant 0 : i32
    %c0_i32_1 = arith.constant 0 : i32
    return %c0_i32, %c0_i32_0 : i32, i32
  }
  func.func @transform_3(%arg0: i32, %arg1: i32) -> (i32, i32, i32) {
    %c0_i32 = arith.constant 0 : i32
    %c0_i32_0 = arith.constant 0 : i32
    return %arg0, %arg1, %c0_i32 : i32, i32, i32
  }
  func.func @transform_4(%arg0: i32, %arg1: i32) -> (i32, i32, i32) {
    %c0_i32 = arith.constant 0 : i32
    %c0_i32_0 = arith.constant 0 : i32
    %c0_i32_1 = arith.constant 0 : i32
    return %arg0, %c0_i32, %c0_i32_0 : i32, i32, i32
  }
  func.func @transform_5(%arg0: i32, %arg1: i32) -> (i32, i32, i32) {
    %c0_i32 = arith.constant 0 : i32
    %c0_i32_0 = arith.constant 0 : i32
    %c0_i32_1 = arith.constant 0 : i32
    return %arg0, %c0_i32, %c0_i32_0 : i32, i32, i32
  }
}

module attributes {stable_mosaic.version = 11 : i64} {
  func.func @_conv_act_kernel(%arg0: i32, %arg1: memref<8x1024xbf16, #tpu.memory_space<vmem>>, %arg2: memref<1024x128xbf16, #tpu.memory_space<vmem>>, %arg3: memref<1x128xf32, #tpu.memory_space<vmem>>, %arg4: memref<8x128xf32, #tpu.memory_space<vmem>>) attributes {dimension_semantics = [#tpu.dimension_semantics<parallel>], iteration_bounds = array<i64: 1>, scalar_prefetch = 0 : i64, scratch_operands = 0 : i64, tpu.core_type = #tpu.core_type<tc>, window_params = [{transform_indices = @transform_0, window_bounds = array<i64: 8, 1024>}, {pipeline_mode = #tpu.pipeline_mode<synchronous>, transform_indices = @transform_1, window_bounds = array<i64: 1024, 128>}, {pipeline_mode = #tpu.pipeline_mode<synchronous>, transform_indices = @transform_2, window_bounds = array<i64: 1, 128>}, {transform_indices = @transform_3, window_bounds = array<i64: 8, 128>}]} {
    %c0 = arith.constant 0 : index
    %c0_0 = arith.constant 0 : index
    %0 = vector.load %arg1[%c0, %c0_0] : memref<8x1024xbf16, #tpu.memory_space<vmem>>, vector<8x1024xbf16>
    %c0_1 = arith.constant 0 : index
    %c0_2 = arith.constant 0 : index
    %1 = vector.load %arg2[%c0_1, %c0_2] : memref<1024x128xbf16, #tpu.memory_space<vmem>>, vector<1024x128xbf16>
    %cst = arith.constant dense<0.000000e+00> : vector<8x128xf32>
    %2 = tpu.matmul %0, %1, %cst {dimension_numbers = #tpu.dot_dimension_numbers<[1], [0], [0], [1], [0, 0, 1, 1], [], []>} : vector<8x1024xbf16>, vector<1024x128xbf16>, vector<8x128xf32> -> vector<8x128xf32>
    %c0_3 = arith.constant 0 : index
    %c0_4 = arith.constant 0 : index
    %3 = vector.load %arg3[%c0_3, %c0_4] : memref<1x128xf32, #tpu.memory_space<vmem>>, vector<1x128xf32>
    %4 = vector.broadcast %3 : vector<1x128xf32> to vector<8x128xf32>
    %5 = arith.addf %2, %4 : vector<8x128xf32>
    %c0_5 = arith.constant 0 : index
    %c0_6 = arith.constant 0 : index
    %6 = vector.load %arg4[%c0_5, %c0_6] : memref<8x128xf32, #tpu.memory_space<vmem>>, vector<8x128xf32>
    tpu.vector_store %arg4[%c0_5, %c0_6], %5 {strides = array<i32>} : memref<8x128xf32, #tpu.memory_space<vmem>>, vector<8x128xf32>,
    return
  }
  func.func @transform_0(%arg0: i32) -> (i32, i32) {
    %c0_i32 = arith.constant 0 : i32
    %c0_i32_0 = arith.constant 0 : i32
    return %arg0, %c0_i32 : i32, i32
  }
  func.func @transform_1(%arg0: i32) -> (i32, i32) {
    %c0_i32 = arith.constant 0 : i32
    %c0_i32_0 = arith.constant 0 : i32
    %c0_i32_1 = arith.constant 0 : i32
    return %c0_i32, %c0_i32_0 : i32, i32
  }
  func.func @transform_2(%arg0: i32) -> (i32, i32) {
    %c0_i32 = arith.constant 0 : i32
    %c0_i32_0 = arith.constant 0 : i32
    %c0_i32_1 = arith.constant 0 : i32
    return %c0_i32, %c0_i32_0 : i32, i32
  }
  func.func @transform_3(%arg0: i32) -> (i32, i32) {
    %c0_i32 = arith.constant 0 : i32
    %c0_i32_0 = arith.constant 0 : i32
    return %arg0, %c0_i32 : i32, i32
  }
}

</mosaic_0001>

<bundles_post_ra>
// kernel: _lambda_.8
= control target key start
LH: loop header
LB: loop body
LE: loop exit
PB: predicated region body
PF: predicated region fallthrough
CT: control target
= control target key end

     0   :  { %s1393_s1 = inlined_call_operand.vmem [shape: bf16[128,128], index: 1, kind: input, shape index: {}]   ;;  %s1394_s2 = inlined_call_operand.vmem [shape: f32[1,128], index: 2, kind: input, shape index: {}]   ;;  %s1395_s0 = inlined_call_operand.vmem [shape: bf16[512,128], index: 0, kind: input, shape index: {}]   ;;  %s1396_s3 = inlined_call_operand.vmem [shape: f32[512,128], index: 3, kind: output, shape index: {}]  }
   0x1   :  { %v966_v0 = vld [vmem:[%s1393_s1 + $0x38] sm:$0xff]  ;;  %v965_v1 = vld [vmem:[%s1393_s1 + $0x30] sm:$0xff]  ;;  %v964_v2 = vld [vmem:[%s1393_s1 + $0x28] sm:$0xff] }
   0x2   :  { %338 = vmatpush.bf16.msra.mxu0 %v966_v0  ;;  %967 = vmatpush.bf16.msra.mxu1 %v966_v0  ;;  %v963_v3 = vld [vmem:[%s1393_s1 + $0x20] sm:$0xff]  ;;  %v962_v4 = vld [vmem:[%s1393_s1 + $0x18] sm:$0xff]  ;;  %v961_v5 = vld [vmem:[%s1393_s1 + $0x10] sm:$0xff] }
   0x3   :  { %968 = vmatpush.bf16.msra.mxu2 %v966_v0  ;;  %969 = vmatpush.bf16.msra.mxu3 %v966_v0  ;;  %v960_v6 = vld [vmem:[%s1393_s1 + $0x8] sm:$0xff]  ;;  %v959_v7 = vld [vmem:[%s1393_s1] sm:$0xff]  ;;  %v929_v16 = vld [vmem:[%s1395_s0 + $0x10] sm:$0xff] }
   0x4   :  { %v927_v8 = vld [vmem:[%s1395_s0] sm:$0xff]  ;;  %v928_v12 = vld [vmem:[%s1395_s0 + $0x8] sm:$0xff]  ;;  %v937_v17 = vld [vmem:[%s1395_s0 + $0x50] sm:$0xff] }
   0x5   :  { %v935_v9 = vld [vmem:[%s1395_s0 + $0x40] sm:$0xff]  ;;  %v936_v13 = vld [vmem:[%s1395_s0 + $0x48] sm:$0xff]  ;;  %v945_v18 = vld [vmem:[%s1395_s0 + $0x90] sm:$0xff] }
   0x6   :  { %339 = vmatpush.bf16.msra.mxu0 %v965_v1  ;;  %970 = vmatpush.bf16.msra.mxu1 %v965_v1  ;;  %v943_v10 = vld [vmem:[%s1395_s0 + $0x80] sm:$0xff]  ;;  %v944_v14 = vld [vmem:[%s1395_s0 + $0x88] sm:$0xff]  ;;  %v953_v19 = vld [vmem:[%s1395_s0 + $0xd0] sm:$0xff] }
   0x7   :  { %971 = vmatpush.bf16.msra.mxu2 %v965_v1  ;;  %972 = vmatpush.bf16.msra.mxu3 %v965_v1  ;;  %v951_v11 = vld [vmem:[%s1395_s0 + $0xc0] sm:$0xff]  ;;  %v952_v15 = vld [vmem:[%s1395_s0 + $0xc8] sm:$0xff]  ;;  %v930_v20 = vld [vmem:[%s1395_s0 + $0x18] sm:$0xff] }
   0x8   :  { %v938_v21 = vld [vmem:[%s1395_s0 + $0x58] sm:$0xff]  ;;  %v931_v24 = vld [vmem:[%s1395_s0 + $0x20] sm:$0xff]  ;;  %v932_v28 = vld [vmem:[%s1395_s0 + $0x28] sm:$0xff] }
   0x9   :  { %v946_v22 = vld [vmem:[%s1395_s0 + $0x98] sm:$0xff]  ;;  %v939_v25 = vld [vmem:[%s1395_s0 + $0x60] sm:$0xff]  ;;  %v940_v29 = vld [vmem:[%s1395_s0 + $0x68] sm:$0xff] }
   0xa   :  { %340 = vmatpush.bf16.msra.mxu0 %v964_v2  ;;  %973 = vmatpush.bf16.msra.mxu1 %v964_v2  ;;  %v954_v23 = vld [vmem:[%s1395_s0 + $0xd8] sm:$0xff]  ;;  %v947_v26 = vld [vmem:[%s1395_s0 + $0xa0] sm:$0xff]  ;;  %v948_v30 = vld [vmem:[%s1395_s0 + $0xa8] sm:$0xff] }
   0xb   :  { %974 = vmatpush.bf16.msra.mxu2 %v964_v2  ;;  %975 = vmatpush.bf16.msra.mxu3 %v964_v2  ;;  %v955_v27 = vld [vmem:[%s1395_s0 + $0xe0] sm:$0xff]  ;;  %v956_v31 = vld [vmem:[%s1395_s0 + $0xe8] sm:$0xff]  ;;  %v933_v32 = vld [vmem:[%s1395_s0 + $0x30] sm:$0xff] }
   0xc   :  { %v941_v33 = vld [vmem:[%s1395_s0 + $0x70] sm:$0xff]  ;;  %v934_v36 = vld [vmem:[%s1395_s0 + $0x38] sm:$0xff]  ;;  %v1135_v40 = vld [vmem:[%s1394_s2] ss:$0 sm:$0xff] }
   0xd   :  { %v949_v34 = vld [vmem:[%s1395_s0 + $0xb0] sm:$0xff]  ;;  %v942_v37 = vld [vmem:[%s1395_s0 + $0x78] sm:$0xff] }
   0xe   :  { %341 = vmatpush.bf16.msra.mxu0 %v963_v3  ;;  %976 = vmatpush.bf16.msra.mxu1 %v963_v3  ;;  %v957_v35 = vld [vmem:[%s1395_s0 + $0xf0] sm:$0xff]  ;;  %v950_v38 = vld [vmem:[%s1395_s0 + $0xb8] sm:$0xff] }
   0xf   :  { %977 = vmatpush.bf16.msra.mxu2 %v963_v3  ;;  %978 = vmatpush.bf16.msra.mxu3 %v963_v3  ;;  %v958_v39 = vld [vmem:[%s1395_s0 + $0xf8] sm:$0xff] }
  0x12   :  { %342 = vmatpush.bf16.msra.mxu0 %v962_v4  ;;  %979 = vmatpush.bf16.msra.mxu1 %v962_v4 }
  0x13   :  { %980 = vmatpush.bf16.msra.mxu2 %v962_v4  ;;  %981 = vmatpush.bf16.msra.mxu3 %v962_v4 }
  0x16   :  { %343 = vmatpush.bf16.msra.mxu0 %v961_v5  ;;  %982 = vmatpush.bf16.msra.mxu1 %v961_v5 }
  0x17   :  { %983 = vmatpush.bf16.msra.mxu2 %v961_v5  ;;  %984 = vmatpush.bf16.msra.mxu3 %v961_v5 }
  0x1a   :  { %344 = vmatpush.bf16.msra.mxu0 %v960_v6  ;;  %985 = vmatpush.bf16.msra.mxu1 %v960_v6 }
  0x1b   :  { %986 = vmatpush.bf16.msra.mxu2 %v960_v6  ;;  %987 = vmatpush.bf16.msra.mxu3 %v960_v6 }
  0x1e   :  { %345 = vmatpush.bf16.msra.mxu0 %v959_v7  ;;  %988 = vmatpush.bf16.msra.mxu1 %v959_v7 }
  0x1f   :  { %989 = vmatpush.bf16.msra.mxu2 %v959_v7  ;;  %990 = vmatpush.bf16.msra.mxu3 %v959_v7 }
  0x21   :  { %346 = vmatmul.bf16.vlgmr.msra.gmra.mxu0 %v927_v8  ;;  %386 = vmatmul.bf16.vlgmr.msra.gmra.mxu1 %v935_v9 }
  0x22   :  { %426 = vmatmul.bf16.vlgmr.msra.gmra.mxu2 %v943_v10  ;;  %466 = vmatmul.bf16.vlgmr.msra.gmra.mxu3 %v951_v11 }
  0x31   :  { %351 = vmatmul.bf16.gmra.mxu0 %v928_v12  ;;  %391 = vmatmul.bf16.gmra.mxu1 %v936_v13 }
  0x32   :  { %431 = vmatmul.bf16.gmra.mxu2 %v944_v14  ;;  %471 = vmatmul.bf16.gmra.mxu3 %v952_v15 }
  0x41   :  { %356 = vmatmul.bf16.gmra.mxu0 %v929_v16  ;;  %396 = vmatmul.bf16.gmra.mxu1 %v937_v17 }
  0x42   :  { %436 = vmatmul.bf16.gmra.mxu2 %v945_v18  ;;  %476 = vmatmul.bf16.gmra.mxu3 %v953_v19 }
  0x51   :  { %361 = vmatmul.bf16.gmra.mxu0 %v930_v20  ;;  %401 = vmatmul.bf16.gmra.mxu1 %v938_v21 }
  0x52   :  { %441 = vmatmul.bf16.gmra.mxu2 %v946_v22  ;;  %481 = vmatmul.bf16.gmra.mxu3 %v954_v23 }
  0x61   :  { %366 = vmatmul.bf16.gmra.mxu0 %v931_v24  ;;  %406 = vmatmul.bf16.gmra.mxu1 %v939_v25 }
  0x62   :  { %446 = vmatmul.bf16.gmra.mxu2 %v947_v26  ;;  %486 = vmatmul.bf16.gmra.mxu3 %v955_v27 }
  0x71   :  { %371 = vmatmul.bf16.gmra.mxu0 %v932_v28  ;;  %411 = vmatmul.bf16.gmra.mxu1 %v940_v29 }
  0x72   :  { %451 = vmatmul.bf16.gmra.mxu2 %v948_v30  ;;  %491 = vmatmul.bf16.gmra.mxu3 %v956_v31 }
  0x81   :  { %376 = vmatmul.bf16.gmra.mxu0 %v933_v32  ;;  %416 = vmatmul.bf16.gmra.mxu1 %v941_v33 }
  0x82   :  { %456 = vmatmul.bf16.gmra.mxu2 %v949_v34  ;;  %496 = vmatmul.bf16.gmra.mxu3 %v957_v35 }
  0x91   :  { %381 = vmatmul.bf16.gmra.mxu0 %v934_v36  ;;  %421 = vmatmul.bf16.gmra.mxu1 %v942_v37 }
  0x92   :  { %461 = vmatmul.bf16.gmra.mxu2 %v950_v38  ;;  %501 = vmatmul.bf16.gmra.mxu3 %v958_v39 }
  0x9e   :  { %v347_v41 = vpop.f32.mrf.mxu0  ;;  %v387_v42 = vpop.f32.mrf.mxu1 }
  0x9f   :  { %v348_v43 = vadd.f32 %v1135_v40, %v347_v41  ;;  %v388_v44 = vadd.f32 %v1135_v40, %v387_v42 }
  0xa1   :  { %vm507_vm0 = vcmp.gt.f32.partialorder %v348_v43, 0.0  ;;  %v571_v45 = vmul.f32 0.2, %v348_v43  ;;  %vm523_vm1 = vcmp.gt.f32.partialorder %v388_v44, 0.0  ;;  %v587_v46 = vmul.f32 0.2, %v388_v44 }
  0xa3   :  { %v635_v47 = vsel %vm507_vm0, %v348_v43, %v571_v45  ;;  %v651_v48 = vsel %vm523_vm1, %v388_v44, %v587_v46 }
  0xa4   :  { %699 = vst [vmem:[%s1396_s3] sm:$0xff] %v635_v47 }
  0xa5   :  { %715 = vst [vmem:[%s1396_s3 + $0x80] sm:$0xff] %v651_v48  ;;  %v427_v49 = vpop.f32.mrf.mxu2  ;;  %v467_v50 = vpop.f32.mrf.mxu3 }
  0xa6   :  { %v428_v51 = vadd.f32 %v1135_v40, %v427_v49  ;;  %v468_v52 = vadd.f32 %v1135_v40, %v467_v50  ;;  %v349_v53 = vpop.f32.mrf.mxu0  ;;  %v389_v54 = vpop.f32.mrf.mxu1 }
  0xa7   :  { %v350_v55 = vadd.f32 %v1135_v40, %v349_v53  ;;  %v390_v56 = vadd.f32 %v1135_v40, %v389_v54 }
  0xa8   :  { %vm539_vm2 = vcmp.gt.f32.partialorder %v428_v51, 0.0  ;;  %v603_v57 = vmul.f32 0.2, %v428_v51  ;;  %vm555_vm3 = vcmp.gt.f32.partialorder %v468_v52, 0.0  ;;  %v619_v58 = vmul.f32 0.2, %v468_v52 }
  0xa9   :  { %vm508_vm4 = vcmp.gt.f32.partialorder %v350_v55, 0.0  ;;  %v572_v59 = vmul.f32 0.2, %v350_v55  ;;  %vm524_vm5 = vcmp.gt.f32.partialorder %v390_v56, 0.0  ;;  %v588_v60 = vmul.f32 0.2, %v390_v56 }
  0xaa   :  { %v667_v61 = vsel %vm539_vm2, %v428_v51, %v603_v57  ;;  %v683_v62 = vsel %vm555_vm3, %v468_v52, %v619_v58 }
  0xab   :  { %731 = vst [vmem:[%s1396_s3 + $0x100] sm:$0xff] %v667_v61  ;;  %v636_v63 = vsel %vm508_vm4, %v350_v55, %v572_v59  ;;  %v652_v0 = vsel %vm524_vm5, %v390_v56, %v588_v60 }
  0xac   :  { %747 = vst [vmem:[%s1396_s3 + $0x180] sm:$0xff] %v683_v62 }
  0xad   :  { %700 = vst [vmem:[%s1396_s3 + $0x8] sm:$0xff] %v636_v63  ;;  %v429_v1 = vpop.f32.mrf.mxu2  ;;  %v469_v2 = vpop.f32.mrf.mxu3 }
  0xae   :  { %716 = vst [vmem:[%s1396_s3 + $0x88] sm:$0xff] %v652_v0  ;;  %v430_v3 = vadd.f32 %v1135_v40, %v429_v1  ;;  %v470_v4 = vadd.f32 %v1135_v40, %v469_v2  ;;  %v352_v5 = vpop.f32.mrf.mxu0  ;;  %v392_v6 = vpop.f32.mrf.mxu1 }
  0xaf   :  { %v353_v7 = vadd.f32 %v1135_v40, %v352_v5  ;;  %v393_v8 = vadd.f32 %v1135_v40, %v392_v6 }
  0xb0   :  { %vm540_vm6 = vcmp.gt.f32.partialorder %v430_v3, 0.0  ;;  %v604_v9 = vmul.f32 0.2, %v430_v3  ;;  %vm556_vm7 = vcmp.gt.f32.partialorder %v470_v4, 0.0  ;;  %v620_v10 = vmul.f32 0.2, %v470_v4 }
  0xb1   :  { %vm509_vm8 = vcmp.gt.f32.partialorder %v353_v7, 0.0  ;;  %v573_v11 = vmul.f32 0.2, %v353_v7  ;;  %vm525_vm9 = vcmp.gt.f32.partialorder %v393_v8, 0.0  ;;  %v589_v12 = vmul.f32 0.2, %v393_v8 }
  0xb2   :  { %v668_v13 = vsel %vm540_vm6, %v430_v3, %v604_v9  ;;  %v684_v14 = vsel %vm556_vm7, %v470_v4, %v620_v10 }
  0xb3   :  { %732 = vst [vmem:[%s1396_s3 + $0x108] sm:$0xff] %v668_v13  ;;  %v637_v15 = vsel %vm509_vm8, %v353_v7, %v573_v11  ;;  %v653_v16 = vsel %vm525_vm9, %v393_v8, %v589_v12 }
  0xb4   :  { %748 = vst [vmem:[%s1396_s3 + $0x188] sm:$0xff] %v684_v14 }
  0xb5   :  { %701 = vst [vmem:[%s1396_s3 + $0x10] sm:$0xff] %v637_v15  ;;  %v432_v17 = vpop.f32.mrf.mxu2  ;;  %v472_v18 = vpop.f32.mrf.mxu3 }
  0xb6   :  { %717 = vst [vmem:[%s1396_s3 + $0x90] sm:$0xff] %v653_v16  ;;  %v433_v19 = vadd.f32 %v1135_v40, %v432_v17  ;;  %v473_v20 = vadd.f32 %v1135_v40, %v472_v18  ;;  %v354_v21 = vpop.f32.mrf.mxu0  ;;  %v394_v22 = vpop.f32.mrf.mxu1 }
  0xb7   :  { %v355_v23 = vadd.f32 %v1135_v40, %v354_v21  ;;  %v395_v24 = vadd.f32 %v1135_v40, %v394_v22 }
  0xb8   :  { %vm541_vm10 = vcmp.gt.f32.partialorder %v433_v19, 0.0  ;;  %v605_v25 = vmul.f32 0.2, %v433_v19  ;;  %vm557_vm11 = vcmp.gt.f32.partialorder %v473_v20, 0.0  ;;  %v621_v26 = vmul.f32 0.2, %v473_v20 }
  0xb9   :  { %vm510_vm12 = vcmp.gt.f32.partialorder %v355_v23, 0.0  ;;  %v574_v27 = vmul.f32 0.2, %v355_v23  ;;  %vm526_vm13 = vcmp.gt.f32.partialorder %v395_v24, 0.0  ;;  %v590_v28 = vmul.f32 0.2, %v395_v24 }
  0xba   :  { %v669_v29 = vsel %vm541_vm10, %v433_v19, %v605_v25  ;;  %v685_v30 = vsel %vm557_vm11, %v473_v20, %v621_v26 }
  0xbb   :  { %733 = vst [vmem:[%s1396_s3 + $0x110] sm:$0xff] %v669_v29  ;;  %v638_v31 = vsel %vm510_vm12, %v355_v23, %v574_v27  ;;  %v654_v32 = vsel %vm526_vm13, %v395_v24, %v590_v28 }
  0xbc   :  { %749 = vst [vmem:[%s1396_s3 + $0x190] sm:$0xff] %v685_v30 }
  0xbd   :  { %702 = vst [vmem:[%s1396_s3 + $0x18] sm:$0xff] %v638_v31  ;;  %v434_v33 = vpop.f32.mrf.mxu2  ;;  %v474_v34 = vpop.f32.mrf.mxu3 }
  0xbe   :  { %718 = vst [vmem:[%s1396_s3 + $0x98] sm:$0xff] %v654_v32  ;;  %v435_v35 = vadd.f32 %v1135_v40, %v434_v33  ;;  %v475_v36 = vadd.f32 %v1135_v40, %v474_v34  ;;  %v357_v37 = vpop.f32.mrf.mxu0  ;;  %v397_v38 = vpop.f32.mrf.mxu1 }
  0xbf   :  { %v358_v39 = vadd.f32 %v1135_v40, %v357_v37  ;;  %v398_v41 = vadd.f32 %v1135_v40, %v397_v38 }
  0xc0   :  { %vm542_vm14 = vcmp.gt.f32.partialorder %v435_v35, 0.0  ;;  %v606_v42 = vmul.f32 0.2, %v435_v35  ;;  %vm558_vm15 = vcmp.gt.f32.partialorder %v475_v36, 0.0  ;;  %v622_v43 = vmul.f32 0.2, %v475_v36 }
  0xc1   :  { %vm511_vm0 = vcmp.gt.f32.partialorder %v358_v39, 0.0  ;;  %v575_v44 = vmul.f32 0.2, %v358_v39  ;;  %vm527_vm1 = vcmp.gt.f32.partialorder %v398_v41, 0.0  ;;  %v591_v45 = vmul.f32 0.2, %v398_v41 }
  0xc2   :  { %v670_v46 = vsel %vm542_vm14, %v435_v35, %v606_v42  ;;  %v686_v47 = vsel %vm558_vm15, %v475_v36, %v622_v43 }
  0xc3   :  { %734 = vst [vmem:[%s1396_s3 + $0x118] sm:$0xff] %v670_v46  ;;  %v639_v48 = vsel %vm511_vm0, %v358_v39, %v575_v44  ;;  %v655_v49 = vsel %vm527_vm1, %v398_v41, %v591_v45 }
  0xc4   :  { %750 = vst [vmem:[%s1396_s3 + $0x198] sm:$0xff] %v686_v47 }
  0xc5   :  { %703 = vst [vmem:[%s1396_s3 + $0x20] sm:$0xff] %v639_v48  ;;  %v437_v50 = vpop.f32.mrf.mxu2  ;;  %v477_v51 = vpop.f32.mrf.mxu3 }
  0xc6   :  { %719 = vst [vmem:[%s1396_s3 + $0xa0] sm:$0xff] %v655_v49  ;;  %v438_v52 = vadd.f32 %v1135_v40, %v437_v50  ;;  %v478_v53 = vadd.f32 %v1135_v40, %v477_v51  ;;  %v359_v54 = vpop.f32.mrf.mxu0  ;;  %v399_v55 = vpop.f32.mrf.mxu1 }
  0xc7   :  { %v360_v56 = vadd.f32 %v1135_v40, %v359_v54  ;;  %v400_v57 = vadd.f32 %v1135_v40, %v399_v55 }
  0xc8   :  { %vm543_vm2 = vcmp.gt.f32.partialorder %v438_v52, 0.0  ;;  %v607_v58 = vmul.f32 0.2, %v438_v52  ;;  %vm559_vm3 = vcmp.gt.f32.partialorder %v478_v53, 0.0  ;;  %v623_v59 = vmul.f32 0.2, %v478_v53 }
  0xc9   :  { %vm512_vm4 = vcmp.gt.f32.partialorder %v360_v56, 0.0  ;;  %v576_v60 = vmul.f32 0.2, %v360_v56  ;;  %vm528_vm5 = vcmp.gt.f32.partialorder %v400_v57, 0.0  ;;  %v592_v61 = vmul.f32 0.2, %v400_v57 }
  0xca   :  { %v671_v62 = vsel %vm543_vm2, %v438_v52, %v607_v58  ;;  %v687_v63 = vsel %vm559_vm3, %v478_v53, %v623_v59 }
  0xcb   :  { %735 = vst [vmem:[%s1396_s3 + $0x120] sm:$0xff] %v671_v62  ;;  %v640_v0 = vsel %vm512_vm4, %v360_v56, %v576_v60  ;;  %v656_v1 = vsel %vm528_vm5, %v400_v57, %v592_v61 }
  0xcc   :  { %751 = vst [vmem:[%s1396_s3 + $0x1a0] sm:$0xff] %v687_v63 }
  0xcd   :  { %704 = vst [vmem:[%s1396_s3 + $0x28] sm:$0xff] %v640_v0  ;;  %v439_v2 = vpop.f32.mrf.mxu2  ;;  %v479_v3 = vpop.f32.mrf.mxu3 }
  0xce   :  { %720 = vst [vmem:[%s1396_s3 + $0xa8] sm:$0xff] %v656_v1  ;;  %v440_v4 = vadd.f32 %v1135_v40, %v439_v2  ;;  %v480_v5 = vadd.f32 %v1135_v40, %v479_v3  ;;  %v362_v6 = vpop.f32.mrf.mxu0  ;;  %v402_v7 = vpop.f32.mrf.mxu1 }
  0xcf   :  { %v363_v8 = vadd.f32 %v1135_v40, %v362_v6  ;;  %v403_v9 = vadd.f32 %v1135_v40, %v402_v7 }
  0xd0   :  { %vm544_vm6 = vcmp.gt.f32.partialorder %v440_v4, 0.0  ;;  %v608_v10 = vmul.f32 0.2, %v440_v4  ;;  %vm560_vm7 = vcmp.gt.f32.partialorder %v480_v5, 0.0  ;;  %v624_v11 = vmul.f32 0.2, %v480_v5 }
  0xd1   :  { %vm513_vm8 = vcmp.gt.f32.partialorder %v363_v8, 0.0  ;;  %v577_v12 = vmul.f32 0.2, %v363_v8  ;;  %vm529_vm9 = vcmp.gt.f32.partialorder %v403_v9, 0.0  ;;  %v593_v13 = vmul.f32 0.2, %v403_v9 }
  0xd2   :  { %v672_v14 = vsel %vm544_vm6, %v440_v4, %v608_v10  ;;  %v688_v15 = vsel %vm560_vm7, %v480_v5, %v624_v11 }
  0xd3   :  { %736 = vst [vmem:[%s1396_s3 + $0x128] sm:$0xff] %v672_v14  ;;  %v641_v16 = vsel %vm513_vm8, %v363_v8, %v577_v12  ;;  %v657_v17 = vsel %vm529_vm9, %v403_v9, %v593_v13 }
  0xd4   :  { %752 = vst [vmem:[%s1396_s3 + $0x1a8] sm:$0xff] %v688_v15 }
  0xd5   :  { %705 = vst [vmem:[%s1396_s3 + $0x30] sm:$0xff] %v641_v16  ;;  %v442_v18 = vpop.f32.mrf.mxu2  ;;  %v482_v19 = vpop.f32.mrf.mxu3 }
  0xd6   :  { %721 = vst [vmem:[%s1396_s3 + $0xb0] sm:$0xff] %v657_v17  ;;  %v443_v20 = vadd.f32 %v1135_v40, %v442_v18  ;;  %v483_v21 = vadd.f32 %v1135_v40, %v482_v19  ;;  %v364_v22 = vpop.f32.mrf.mxu0  ;;  %v404_v23 = vpop.f32.mrf.mxu1 }
  0xd7   :  { %v365_v24 = vadd.f32 %v1135_v40, %v364_v22  ;;  %v405_v25 = vadd.f32 %v1135_v40, %v404_v23 }
  0xd8   :  { %vm545_vm10 = vcmp.gt.f32.partialorder %v443_v20, 0.0  ;;  %v609_v26 = vmul.f32 0.2, %v443_v20  ;;  %vm561_vm11 = vcmp.gt.f32.partialorder %v483_v21, 0.0  ;;  %v625_v27 = vmul.f32 0.2, %v483_v21 }
  0xd9   :  { %vm514_vm12 = vcmp.gt.f32.partialorder %v365_v24, 0.0  ;;  %v578_v28 = vmul.f32 0.2, %v365_v24  ;;  %vm530_vm13 = vcmp.gt.f32.partialorder %v405_v25, 0.0  ;;  %v594_v29 = vmul.f32 0.2, %v405_v25 }
  0xda   :  { %v673_v30 = vsel %vm545_vm10, %v443_v20, %v609_v26  ;;  %v689_v31 = vsel %vm561_vm11, %v483_v21, %v625_v27 }
  0xdb   :  { %737 = vst [vmem:[%s1396_s3 + $0x130] sm:$0xff] %v673_v30  ;;  %v642_v32 = vsel %vm514_vm12, %v365_v24, %v578_v28  ;;  %v658_v33 = vsel %vm530_vm13, %v405_v25, %v594_v29 }
  0xdc   :  { %753 = vst [vmem:[%s1396_s3 + $0x1b0] sm:$0xff] %v689_v31 }
  0xdd   :  { %706 = vst [vmem:[%s1396_s3 + $0x38] sm:$0xff] %v642_v32  ;;  %v444_v34 = vpop.f32.mrf.mxu2  ;;  %v484_v35 = vpop.f32.mrf.mxu3 }
  0xde   :  { %722 = vst [vmem:[%s1396_s3 + $0xb8] sm:$0xff] %v658_v33  ;;  %v445_v36 = vadd.f32 %v1135_v40, %v444_v34  ;;  %v485_v37 = vadd.f32 %v1135_v40, %v484_v35  ;;  %v367_v38 = vpop.f32.mrf.mxu0  ;;  %v407_v39 = vpop.f32.mrf.mxu1 }
  0xdf   :  { %v368_v41 = vadd.f32 %v1135_v40, %v367_v38  ;;  %v408_v42 = vadd.f32 %v1135_v40, %v407_v39 }
  0xe0   :  { %vm546_vm14 = vcmp.gt.f32.partialorder %v445_v36, 0.0  ;;  %v610_v43 = vmul.f32 0.2, %v445_v36  ;;  %vm562_vm15 = vcmp.gt.f32.partialorder %v485_v37, 0.0  ;;  %v626_v44 = vmul.f32 0.2, %v485_v37 }
  0xe1   :  { %vm515_vm0 = vcmp.gt.f32.partialorder %v368_v41, 0.0  ;;  %v579_v45 = vmul.f32 0.2, %v368_v41  ;;  %vm531_vm1 = vcmp.gt.f32.partialorder %v408_v42, 0.0  ;;  %v595_v46 = vmul.f32 0.2, %v408_v42 }
  0xe2   :  { %v674_v47 = vsel %vm546_vm14, %v445_v36, %v610_v43  ;;  %v690_v48 = vsel %vm562_vm15, %v485_v37, %v626_v44 }
  0xe3   :  { %738 = vst [vmem:[%s1396_s3 + $0x138] sm:$0xff] %v674_v47  ;;  %v643_v49 = vsel %vm515_vm0, %v368_v41, %v579_v45  ;;  %v659_v50 = vsel %vm531_vm1, %v408_v42, %v595_v46 }
  0xe4   :  { %754 = vst [vmem:[%s1396_s3 + $0x1b8] sm:$0xff] %v690_v48 }
  0xe5   :  { %707 = vst [vmem:[%s1396_s3 + $0x40] sm:$0xff] %v643_v49  ;;  %v447_v51 = vpop.f32.mrf.mxu2  ;;  %v487_v52 = vpop.f32.mrf.mxu3 }
  0xe6   :  { %723 = vst [vmem:[%s1396_s3 + $0xc0] sm:$0xff] %v659_v50  ;;  %v448_v53 = vadd.f32 %v1135_v40, %v447_v51  ;;  %v488_v54 = vadd.f32 %v1135_v40, %v487_v52  ;;  %v369_v55 = vpop.f32.mrf.mxu0  ;;  %v409_v56 = vpop.f32.mrf.mxu1 }
  0xe7   :  { %v370_v57 = vadd.f32 %v1135_v40, %v369_v55  ;;  %v410_v58 = vadd.f32 %v1135_v40, %v409_v56 }
  0xe8   :  { %vm547_vm2 = vcmp.gt.f32.partialorder %v448_v53, 0.0  ;;  %v611_v59 = vmul.f32 0.2, %v448_v53  ;;  %vm563_vm3 = vcmp.gt.f32.partialorder %v488_v54, 0.0  ;;  %v627_v60 = vmul.f32 0.2, %v488_v54 }
  0xe9   :  { %vm516_vm4 = vcmp.gt.f32.partialorder %v370_v57, 0.0  ;;  %v580_v61 = vmul.f32 0.2, %v370_v57  ;;  %vm532_vm5 = vcmp.gt.f32.partialorder %v410_v58, 0.0  ;;  %v596_v62 = vmul.f32 0.2, %v410_v58 }
  0xea   :  { %v675_v63 = vsel %vm547_vm2, %v448_v53, %v611_v59  ;;  %v691_v0 = vsel %vm563_vm3, %v488_v54, %v627_v60 }
  0xeb   :  { %739 = vst [vmem:[%s1396_s3 + $0x140] sm:$0xff] %v675_v63  ;;  %v644_v1 = vsel %vm516_vm4, %v370_v57, %v580_v61  ;;  %v660_v2 = vsel %vm532_vm5, %v410_v58, %v596_v62 }
  0xec   :  { %755 = vst [vmem:[%s1396_s3 + $0x1c0] sm:$0xff] %v691_v0 }
  0xed   :  { %708 = vst [vmem:[%s1396_s3 + $0x48] sm:$0xff] %v644_v1  ;;  %v449_v3 = vpop.f32.mrf.mxu2  ;;  %v489_v4 = vpop.f32.mrf.mxu3 }
  0xee   :  { %724 = vst [vmem:[%s1396_s3 + $0xc8] sm:$0xff] %v660_v2  ;;  %v450_v5 = vadd.f32 %v1135_v40, %v449_v3  ;;  %v490_v6 = vadd.f32 %v1135_v40, %v489_v4  ;;  %v372_v7 = vpop.f32.mrf.mxu0  ;;  %v412_v8 = vpop.f32.mrf.mxu1 }
  0xef   :  { %v373_v9 = vadd.f32 %v1135_v40, %v372_v7  ;;  %v413_v10 = vadd.f32 %v1135_v40, %v412_v8 }
  0xf0   :  { %vm548_vm6 = vcmp.gt.f32.partialorder %v450_v5, 0.0  ;;  %v612_v11 = vmul.f32 0.2, %v450_v5  ;;  %vm564_vm7 = vcmp.gt.f32.partialorder %v490_v6, 0.0  ;;  %v628_v12 = vmul.f32 0.2, %v490_v6 }
  0xf1   :  { %vm517_vm8 = vcmp.gt.f32.partialorder %v373_v9, 0.0  ;;  %v581_v13 = vmul.f32 0.2, %v373_v9  ;;  %vm533_vm9 = vcmp.gt.f32.partialorder %v413_v10, 0.0  ;;  %v597_v14 = vmul.f32 0.2, %v413_v10 }
  0xf2   :  { %v676_v15 = vsel %vm548_vm6, %v450_v5, %v612_v11  ;;  %v692_v16 = vsel %vm564_vm7, %v490_v6, %v628_v12 }
  0xf3   :  { %740 = vst [vmem:[%s1396_s3 + $0x148] sm:$0xff] %v676_v15  ;;  %v645_v17 = vsel %vm517_vm8, %v373_v9, %v581_v13  ;;  %v661_v18 = vsel %vm533_vm9, %v413_v10, %v597_v14 }
  0xf4   :  { %756 = vst [vmem:[%s1396_s3 + $0x1c8] sm:$0xff] %v692_v16 }
  0xf5   :  { %709 = vst [vmem:[%s1396_s3 + $0x50] sm:$0xff] %v645_v17  ;;  %v452_v19 = vpop.f32.mrf.mxu2  ;;  %v492_v20 = vpop.f32.mrf.mxu3 }
  0xf6   :  { %725 = vst [vmem:[%s1396_s3 + $0xd0] sm:$0xff] %v661_v18  ;;  %v453_v21 = vadd.f32 %v1135_v40, %v452_v19  ;;  %v493_v22 = vadd.f32 %v1135_v40, %v492_v20  ;;  %v374_v23 = vpop.f32.mrf.mxu0  ;;  %v414_v24 = vpop.f32.mrf.mxu1 }
  0xf7   :  { %v375_v25 = vadd.f32 %v1135_v40, %v374_v23  ;;  %v415_v26 = vadd.f32 %v1135_v40, %v414_v24 }
  0xf8   :  { %vm549_vm10 = vcmp.gt.f32.partialorder %v453_v21, 0.0  ;;  %v613_v27 = vmul.f32 0.2, %v453_v21  ;;  %vm565_vm11 = vcmp.gt.f32.partialorder %v493_v22, 0.0  ;;  %v629_v28 = vmul.f32 0.2, %v493_v22 }
  0xf9   :  { %vm518_vm12 = vcmp.gt.f32.partialorder %v375_v25, 0.0  ;;  %v582_v29 = vmul.f32 0.2, %v375_v25  ;;  %vm534_vm13 = vcmp.gt.f32.partialorder %v415_v26, 0.0  ;;  %v598_v30 = vmul.f32 0.2, %v415_v26 }
  0xfa   :  { %v677_v31 = vsel %vm549_vm10, %v453_v21, %v613_v27  ;;  %v693_v32 = vsel %vm565_vm11, %v493_v22, %v629_v28 }
  0xfb   :  { %741 = vst [vmem:[%s1396_s3 + $0x150] sm:$0xff] %v677_v31  ;;  %v646_v33 = vsel %vm518_vm12, %v375_v25, %v582_v29  ;;  %v662_v34 = vsel %vm534_vm13, %v415_v26, %v598_v30 }
  0xfc   :  { %757 = vst [vmem:[%s1396_s3 + $0x1d0] sm:$0xff] %v693_v32 }
  0xfd   :  { %710 = vst [vmem:[%s1396_s3 + $0x58] sm:$0xff] %v646_v33  ;;  %v454_v35 = vpop.f32.mrf.mxu2  ;;  %v494_v36 = vpop.f32.mrf.mxu3 }
  0xfe   :  { %726 = vst [vmem:[%s1396_s3 + $0xd8] sm:$0xff] %v662_v34  ;;  %v455_v37 = vadd.f32 %v1135_v40, %v454_v35  ;;  %v495_v38 = vadd.f32 %v1135_v40, %v494_v36  ;;  %v377_v39 = vpop.f32.mrf.mxu0  ;;  %v417_v41 = vpop.f32.mrf.mxu1 }
  0xff   :  { %v378_v42 = vadd.f32 %v1135_v40, %v377_v39  ;;  %v418_v43 = vadd.f32 %v1135_v40, %v417_v41 }
 0x100   :  { %vm550_vm14 = vcmp.gt.f32.partialorder %v455_v37, 0.0  ;;  %v614_v44 = vmul.f32 0.2, %v455_v37  ;;  %vm566_vm15 = vcmp.gt.f32.partialorder %v495_v38, 0.0  ;;  %v630_v45 = vmul.f32 0.2, %v495_v38 }
 0x101   :  { %vm519_vm0 = vcmp.gt.f32.partialorder %v378_v42, 0.0  ;;  %v583_v46 = vmul.f32 0.2, %v378_v42  ;;  %vm535_vm1 = vcmp.gt.f32.partialorder %v418_v43, 0.0  ;;  %v599_v47 = vmul.f32 0.2, %v418_v43 }
 0x102   :  { %v678_v48 = vsel %vm550_vm14, %v455_v37, %v614_v44  ;;  %v694_v49 = vsel %vm566_vm15, %v495_v38, %v630_v45 }
 0x103   :  { %742 = vst [vmem:[%s1396_s3 + $0x158] sm:$0xff] %v678_v48  ;;  %v647_v50 = vsel %vm519_vm0, %v378_v42, %v583_v46  ;;  %v663_v51 = vsel %vm535_vm1, %v418_v43, %v599_v47 }
 0x104   :  { %758 = vst [vmem:[%s1396_s3 + $0x1d8] sm:$0xff] %v694_v49 }
 0x105   :  { %711 = vst [vmem:[%s1396_s3 + $0x60] sm:$0xff] %v647_v50  ;;  %v457_v52 = vpop.f32.mrf.mxu2  ;;  %v497_v53 = vpop.f32.mrf.mxu3 }
 0x106   :  { %727 = vst [vmem:[%s1396_s3 + $0xe0] sm:$0xff] %v663_v51  ;;  %v458_v54 = vadd.f32 %v1135_v40, %v457_v52  ;;  %v498_v55 = vadd.f32 %v1135_v40, %v497_v53  ;;  %v379_v56 = vpop.f32.mrf.mxu0  ;;  %v419_v57 = vpop.f32.mrf.mxu1 }
 0x107   :  { %v380_v58 = vadd.f32 %v1135_v40, %v379_v56  ;;  %v420_v59 = vadd.f32 %v1135_v40, %v419_v57 }
 0x108   :  { %vm551_vm2 = vcmp.gt.f32.partialorder %v458_v54, 0.0  ;;  %v615_v60 = vmul.f32 0.2, %v458_v54  ;;  %vm567_vm3 = vcmp.gt.f32.partialorder %v498_v55, 0.0  ;;  %v631_v61 = vmul.f32 0.2, %v498_v55 }
 0x109   :  { %vm520_vm4 = vcmp.gt.f32.partialorder %v380_v58, 0.0  ;;  %v584_v62 = vmul.f32 0.2, %v380_v58  ;;  %vm536_vm5 = vcmp.gt.f32.partialorder %v420_v59, 0.0  ;;  %v600_v63 = vmul.f32 0.2, %v420_v59 }
 0x10a   :  { %v679_v0 = vsel %vm551_vm2, %v458_v54, %v615_v60  ;;  %v695_v1 = vsel %vm567_vm3, %v498_v55, %v631_v61 }
 0x10b   :  { %743 = vst [vmem:[%s1396_s3 + $0x160] sm:$0xff] %v679_v0  ;;  %v648_v2 = vsel %vm520_vm4, %v380_v58, %v584_v62  ;;  %v664_v3 = vsel %vm536_vm5, %v420_v59, %v600_v63 }
 0x10c   :  { %759 = vst [vmem:[%s1396_s3 + $0x1e0] sm:$0xff] %v695_v1 }
 0x10d   :  { %712 = vst [vmem:[%s1396_s3 + $0x68] sm:$0xff] %v648_v2  ;;  %v459_v4 = vpop.f32.mrf.mxu2  ;;  %v499_v5 = vpop.f32.mrf.mxu3 }
 0x10e   :  { %728 = vst [vmem:[%s1396_s3 + $0xe8] sm:$0xff] %v664_v3  ;;  %v460_v6 = vadd.f32 %v1135_v40, %v459_v4  ;;  %v500_v7 = vadd.f32 %v1135_v40, %v499_v5  ;;  %v382_v8 = vpop.f32.mrf.mxu0  ;;  %v422_v9 = vpop.f32.mrf.mxu1 }
 0x10f   :  { %v383_v10 = vadd.f32 %v1135_v40, %v382_v8  ;;  %v423_v11 = vadd.f32 %v1135_v40, %v422_v9 }
 0x110   :  { %vm552_vm6 = vcmp.gt.f32.partialorder %v460_v6, 0.0  ;;  %v616_v12 = vmul.f32 0.2, %v460_v6  ;;  %vm568_vm7 = vcmp.gt.f32.partialorder %v500_v7, 0.0  ;;  %v632_v13 = vmul.f32 0.2, %v500_v7 }
 0x111   :  { %vm521_vm8 = vcmp.gt.f32.partialorder %v383_v10, 0.0  ;;  %v585_v14 = vmul.f32 0.2, %v383_v10  ;;  %vm537_vm9 = vcmp.gt.f32.partialorder %v423_v11, 0.0  ;;  %v601_v15 = vmul.f32 0.2, %v423_v11 }
 0x112   :  { %v680_v16 = vsel %vm552_vm6, %v460_v6, %v616_v12  ;;  %v696_v17 = vsel %vm568_vm7, %v500_v7, %v632_v13 }
 0x113   :  { %744 = vst [vmem:[%s1396_s3 + $0x168] sm:$0xff] %v680_v16  ;;  %v649_v18 = vsel %vm521_vm8, %v383_v10, %v585_v14  ;;  %v665_v19 = vsel %vm537_vm9, %v423_v11, %v601_v15 }
 0x114   :  { %760 = vst [vmem:[%s1396_s3 + $0x1e8] sm:$0xff] %v696_v17 }
 0x115   :  { %713 = vst [vmem:[%s1396_s3 + $0x70] sm:$0xff] %v649_v18  ;;  %v462_v20 = vpop.f32.mrf.mxu2  ;;  %v502_v21 = vpop.f32.mrf.mxu3 }
 0x116   :  { %729 = vst [vmem:[%s1396_s3 + $0xf0] sm:$0xff] %v665_v19  ;;  %v463_v22 = vadd.f32 %v1135_v40, %v462_v20  ;;  %v503_v23 = vadd.f32 %v1135_v40, %v502_v21  ;;  %v384_v24 = vpop.f32.mrf.mxu0  ;;  %v424_v25 = vpop.f32.mrf.mxu1 }
 0x117   :  { %v385_v26 = vadd.f32 %v1135_v40, %v384_v24  ;;  %v425_v27 = vadd.f32 %v1135_v40, %v424_v25 }
 0x118   :  { %vm553_vm10 = vcmp.gt.f32.partialorder %v463_v22, 0.0  ;;  %v617_v28 = vmul.f32 0.2, %v463_v22  ;;  %vm569_vm11 = vcmp.gt.f32.partialorder %v503_v23, 0.0  ;;  %v633_v29 = vmul.f32 0.2, %v503_v23 }
 0x119   :  { %vm522_vm12 = vcmp.gt.f32.partialorder %v385_v26, 0.0  ;;  %v586_v30 = vmul.f32 0.2, %v385_v26  ;;  %vm538_vm13 = vcmp.gt.f32.partialorder %v425_v27, 0.0  ;;  %v602_v31 = vmul.f32 0.2, %v425_v27 }
 0x11a   :  { %v681_v32 = vsel %vm553_vm10, %v463_v22, %v617_v28  ;;  %v697_v33 = vsel %vm569_vm11, %v503_v23, %v633_v29 }
 0x11b   :  { %745 = vst [vmem:[%s1396_s3 + $0x170] sm:$0xff] %v681_v32  ;;  %v650_v34 = vsel %vm522_vm12, %v385_v26, %v586_v30  ;;  %v666_v35 = vsel %vm538_vm13, %v425_v27, %v602_v31 }
 0x11c   :  { %761 = vst [vmem:[%s1396_s3 + $0x1f0] sm:$0xff] %v697_v33 }
 0x11d   :  { %714 = vst [vmem:[%s1396_s3 + $0x78] sm:$0xff] %v650_v34  ;;  %v464_v36 = vpop.f32.mrf.mxu2  ;;  %v504_v37 = vpop.f32.mrf.mxu3 }
 0x11e   :  { %730 = vst [vmem:[%s1396_s3 + $0xf8] sm:$0xff] %v666_v35  ;;  %v465_v38 = vadd.f32 %v1135_v40, %v464_v36  ;;  %v505_v39 = vadd.f32 %v1135_v40, %v504_v37 }
 0x120   :  { %vm554_vm14 = vcmp.gt.f32.partialorder %v465_v38, 0.0  ;;  %v618_v41 = vmul.f32 0.2, %v465_v38  ;;  %vm570_vm15 = vcmp.gt.f32.partialorder %v505_v39, 0.0  ;;  %v634_v42 = vmul.f32 0.2, %v505_v39 }
 0x122   :  { %v682_v43 = vsel %vm554_vm14, %v465_v38, %v618_v41  ;;  %v698_v44 = vsel %vm570_vm15, %v505_v39, %v634_v42 }
 0x123   :  { %746 = vst [vmem:[%s1396_s3 + $0x178] sm:$0xff] %v682_v43 }
 0x124   :  { %762 = vst [vmem:[%s1396_s3 + $0x1f8] sm:$0xff] %v698_v44 }

// kernel: _lambda_.9
= control target key start
LH: loop header
LB: loop body
LE: loop exit
PB: predicated region body
PF: predicated region fallthrough
CT: control target
= control target key end

     0   :  { %s779_s18 = smov 0   ;;  %s781_s19 = smov 0   ;;  %s875_s0 = inlined_call_operand.vmem [shape: bf16[2,64,128], index: 0, kind: input, shape index: {}]   ;;  %s876_s1 = inlined_call_operand.vmem [shape: bf16[128,128], index: 1, kind: input, shape index: {}]   ;;  %s877_s2 = inlined_call_operand.vmem [shape: f32[1,128], index: 2, kind: input, shape index: {}]   ;;  %s878_s3 = inlined_call_operand.vmem [shape: f32[2,64,128], index: 3, kind: output, shape index: {0}]   ;;  %s879_s4 = inlined_call_operand.vmem [shape: f32[2,1,128], index: 4, kind: output, shape index: {1}]   ;;  %s880_s5 = inlined_call_operand.vmem [shape: f32[2,1,128], index: 5, kind: output, shape index: {2}]  }
   0x1   :  { %s783_s20 = smov 0  }
   0x2 LB: > { %s28_s21 = sadd.s32 1, %s742_s19  ;;  %p605_p0 = scmp.ge.s32.totalorder %s746_s20, 1  ;;  %s746_s20 = sphi %s783_s20, %s16_s20   ;;  %s742_s19 = sphi %s781_s19, %s882_s19   ;;  %s738_s18 = sphi %s779_s18, %s881_s18  }
   0x3   : > { %p30_p1 = scmp.ge.s32.totalorder %s28_s21, 2  ;;  %p213_p2 = scmp.lt.s32.totalorder %s746_s20, 3 }
   0x5   : > { %s884_s21 = smov (%p30_p1, %s28_s21), 0  ;;  %p214_p3 = pnand %p605_p0, %p213_p2 }
   0x6   : > { %p256_p4 = scmp.lt.s32.totalorder (!%p214_p3), %s738_s18, 1 }
   0x7   : > { %217 = sbr.rel (%p214_p3) target bundleno = 211 (0xd3), region = 32 }
   0xc   : > { %v673_v0 = vld [vmem:[%s876_s1 + $0x38] sm:$0xff]  ;;  %v672_v1 = vld [vmem:[%s876_s1 + $0x30] sm:$0xff]  ;;  %v671_v2 = vld [vmem:[%s876_s1 + $0x28] sm:$0xff]  ;;  %s886_s18 = smov (!%p256_p4, %s738_s18), 1  ;;  %v748_v12 = vmov 0.0  }
   0xd   : > { %387 = vmatpush.bf16.msra.mxu0 %v673_v0  ;;  %674 = vmatpush.bf16.msra.mxu1 %v673_v0  ;;  %v670_v3 = vld [vmem:[%s876_s1 + $0x20] sm:$0xff]  ;;  %v669_v4 = vld [vmem:[%s876_s1 + $0x18] sm:$0xff]  ;;  %v668_v5 = vld [vmem:[%s876_s1 + $0x10] sm:$0xff]  ;;  %s660_s11 = sshll.u32 %s886_s18, 5  ;;  %s835_s23 = scalar_lea.vmem %s879_s4, %s886_s18 }
   0xe   : > { %675 = vmatpush.bf16.msra.mxu2 %v673_v0  ;;  %676 = vmatpush.bf16.msra.mxu3 %v673_v0  ;;  %v667_v6 = vld [vmem:[%s876_s1 + $0x8] sm:$0xff]  ;;  %v666_v7 = vld [vmem:[%s876_s1] sm:$0xff]  ;;  %s263_s16 = scalar_lea.vmem %s875_s0, %s660_s11  ;;  %s841_s26 = scalar_lea.vmem %s880_s5, %s886_s18  ;;  %285 = vst [vmem:[%s835_s23] sm:$0x1] %v748_v12 }
   0xf   : > { %v662_v8 = vld [vmem:[%s263_s16] sm:$0xff]  ;;  %v663_v9 = vld [vmem:[%s263_s16 + $0x8] sm:$0xff]  ;;  %v664_v10 = vld [vmem:[%s263_s16 + $0x10] sm:$0xff]  ;;  %286 = vst [vmem:[%s841_s26] sm:$0x1] %v748_v12  ;;  %s661_s27 = sshll.u32 %s886_s18, 6 }
  0x10   : > { %v665_v11 = vld [vmem:[%s263_s16 + $0x18] sm:$0xff]  ;;  %v723_v13 = vld [vmem:[%s877_s2] ss:$0 sm:$0xff]  ;;  %s852_s7 = scalar_lea.vmem %s878_s3, %s661_s27 }
  0x11   : > { %388 = vmatpush.bf16.msra.mxu0 %v672_v1  ;;  %677 = vmatpush.bf16.msra.mxu1 %v672_v1 }
  0x12   : > { %678 = vmatpush.bf16.msra.mxu2 %v672_v1  ;;  %679 = vmatpush.bf16.msra.mxu3 %v672_v1 }
  0x15   : > { %389 = vmatpush.bf16.msra.mxu0 %v671_v2  ;;  %680 = vmatpush.bf16.msra.mxu1 %v671_v2  ;;  %v424_v61 = vld [vmem:[%s835_s23] sm:$0x1] }
  0x16   : > { %681 = vmatpush.bf16.msra.mxu2 %v671_v2  ;;  %682 = vmatpush.bf16.msra.mxu3 %v671_v2  ;;  %v440_v0 = vld [vmem:[%s841_s26] sm:$0x1] }
  0x19   : > { %390 = vmatpush.bf16.msra.mxu0 %v670_v3  ;;  %683 = vmatpush.bf16.msra.mxu1 %v670_v3 }
  0x1a   : > { %684 = vmatpush.bf16.msra.mxu2 %v670_v3  ;;  %685 = vmatpush.bf16.msra.mxu3 %v670_v3 }
  0x1d   : > { %391 = vmatpush.bf16.msra.mxu0 %v669_v4  ;;  %686 = vmatpush.bf16.msra.mxu1 %v669_v4 }
  0x1e   : > { %687 = vmatpush.bf16.msra.mxu2 %v669_v4  ;;  %688 = vmatpush.bf16.msra.mxu3 %v669_v4 }
  0x21   : > { %392 = vmatpush.bf16.msra.mxu0 %v668_v5  ;;  %689 = vmatpush.bf16.msra.mxu1 %v668_v5 }
  0x22   : > { %690 = vmatpush.bf16.msra.mxu2 %v668_v5  ;;  %691 = vmatpush.bf16.msra.mxu3 %v668_v5 }
  0x25   : > { %393 = vmatpush.bf16.msra.mxu0 %v667_v6  ;;  %692 = vmatpush.bf16.msra.mxu1 %v667_v6 }
  0x26   : > { %693 = vmatpush.bf16.msra.mxu2 %v667_v6  ;;  %694 = vmatpush.bf16.msra.mxu3 %v667_v6 }
  0x29   : > { %394 = vmatpush.bf16.msra.mxu0 %v666_v7  ;;  %695 = vmatpush.bf16.msra.mxu1 %v666_v7 }
  0x2a   : > { %696 = vmatpush.bf16.msra.mxu2 %v666_v7  ;;  %697 = vmatpush.bf16.msra.mxu3 %v666_v7 }
  0x2c   : > { %395 = vmatmul.bf16.vlgmr.msra.gmra.mxu0 %v662_v8  ;;  %400 = vmatmul.bf16.vlgmr.msra.gmra.mxu1 %v663_v9 }
  0x2d   : > { %405 = vmatmul.bf16.vlgmr.msra.gmra.mxu2 %v664_v10  ;;  %410 = vmatmul.bf16.vlgmr.msra.gmra.mxu3 %v665_v11 }
  0xa9   : > { %v396_v14 = vpop.f32.mrf.mxu0  ;;  %v401_v15 = vpop.f32.mrf.mxu1 }
  0xaa   : > { %v397_v16 = vadd.f32 %v723_v13, %v396_v14  ;;  %v402_v17 = vadd.f32 %v723_v13, %v401_v15 }
  0xac   : > { %416 = vst [vmem:[%s852_s7] sm:$0xff] %v397_v16  ;;  %v441_v26 = vmul.f32 %v397_v16, %v397_v16  ;;  %v443_v29 = vmul.f32 %v402_v17, %v402_v17 }
  0xad   : > { %418 = vst [vmem:[%s852_s7 + $0x10] sm:$0xff] %v402_v17 }
  0xb0   : > { %v406_v18 = vpop.f32.mrf.mxu2  ;;  %v411_v19 = vpop.f32.mrf.mxu3 }
  0xb1   : > { %v407_v20 = vadd.f32 %v723_v13, %v406_v18  ;;  %v412_v21 = vadd.f32 %v723_v13, %v411_v19  ;;  %v398_v22 = vpop.f32.mrf.mxu0  ;;  %v403_v23 = vpop.f32.mrf.mxu1 }
  0xb2   : > { %v399_v24 = vadd.f32 %v723_v13, %v398_v22  ;;  %v404_v25 = vadd.f32 %v723_v13, %v403_v23 }
  0xb3   : > { %420 = vst [vmem:[%s852_s7 + $0x20] sm:$0xff] %v407_v20  ;;  %v445_v39 = vmul.f32 %v407_v20, %v407_v20  ;;  %v447_v45 = vmul.f32 %v412_v21, %v412_v21 }
  0xb4   : > { %422 = vst [vmem:[%s852_s7 + $0x30] sm:$0xff] %v412_v21  ;;  %v425_v27 = vadd.f32 %v399_v24, %v397_v16  ;;  %v442_v28 = vmul.f32 %v399_v24, %v399_v24  ;;  %v444_v33 = vmul.f32 %v404_v25, %v404_v25 }
  0xb5   : > { %417 = vst [vmem:[%s852_s7 + $0x8] sm:$0xff] %v399_v24 }
  0xb6   : > { %v449_v30 = vadd.f32 %v442_v28, %v441_v26  ;;  %419 = vst [vmem:[%s852_s7 + $0x18] sm:$0xff] %v404_v25  ;;  %v426_v31 = vadd.f32 %v425_v27, %v402_v17 }
  0xb8   : > { %v427_v32 = vadd.f32 %v426_v31, %v404_v25  ;;  %v450_v34 = vadd.f32 %v449_v30, %v443_v29  ;;  %v408_v35 = vpop.f32.mrf.mxu2  ;;  %v413_v36 = vpop.f32.mrf.mxu3 }
  0xb9   : > { %v409_v37 = vadd.f32 %v723_v13, %v408_v35  ;;  %v414_v38 = vadd.f32 %v723_v13, %v413_v36 }
  0xba   : > { %v451_v40 = vadd.f32 %v450_v34, %v444_v33  ;;  %v428_v41 = vadd.f32 %v427_v32, %v407_v20 }
  0xbb   : > { %421 = vst [vmem:[%s852_s7 + $0x28] sm:$0xff] %v409_v37  ;;  %v446_v43 = vmul.f32 %v409_v37, %v409_v37  ;;  %v448_v49 = vmul.f32 %v414_v38, %v414_v38 }
  0xbc   : > { %v429_v42 = vadd.f32 %v428_v41, %v409_v37  ;;  %v452_v44 = vadd.f32 %v451_v40, %v445_v39  ;;  %423 = vst [vmem:[%s852_s7 + $0x38] sm:$0xff] %v414_v38 }
  0xbe   : > { %v453_v46 = vadd.f32 %v452_v44, %v446_v43  ;;  %v430_v47 = vadd.f32 %v429_v42, %v412_v21 }
  0xc0   : > { %v431_v48 = vadd.f32 %v430_v47, %v414_v38  ;;  %v454_v50 = vadd.f32 %v453_v46, %v447_v45 }
  0xc2   : > { %v432_v51 = vrot.slane %v431_v48, 4  ;;  %v455_v52 = vadd.f32 %v454_v50, %v448_v49 }
  0xc4   : > { %v433_v53 = vadd.f32 %v432_v51, %v431_v48  ;;  %v456_v54 = vrot.slane %v455_v52, 4 }
  0xc6   : > { %v434_v55 = vrot.slane %v433_v53, 2  ;;  %v457_v56 = vadd.f32 %v456_v54, %v455_v52 }
  0xc8   : > { %v435_v57 = vadd.f32 %v434_v55, %v433_v53  ;;  %v458_v58 = vrot.slane %v457_v56, 2 }
  0xca   : > { %v436_v59 = vrot.slane %v435_v57, 1  ;;  %v459_v60 = vadd.f32 %v458_v58, %v457_v56 }
  0xcc   : > { %v437_v62 = vadd.f32 %v436_v59, %v435_v57  ;;  %v460_v63 = vrot.slane %v459_v60, 1 }
  0xce   : > { %v438_v1 = vadd.f32 %v437_v62, %v424_v61  ;;  %v461_v2 = vadd.f32 %v460_v63, %v459_v60 }
  0xd0   : > { %439 = vst [vmem:[%s835_s23] sm:$0x1] %v438_v1  ;;  %v462_v3 = vadd.f32 %v461_v2, %v440_v0 }
  0xd2   : > { %463 = vst [vmem:[%s841_s26] sm:$0x1] %v462_v3 }
  0xd3 PF: > { %s16_s20 = sadd.s32 1, %s746_s20   ;;  %s881_s18 = smov %s742_s19 }
  0xd4   : > { %p13_p5 = scmp.ge.s32.totalorder %s16_s20, 4   ;;  %s882_s19 = smov %s884_s21 }
  0xd6   :  { %15 = sbr.rel (!%p13_p5) target bundleno = 2 (0x2), region = 90 }

// kernel: _lambda_.10
= control target key start
LH: loop header
LB: loop body
LE: loop exit
PB: predicated region body
PF: predicated region fallthrough
CT: control target
= control target key end

     0   :  { %s506_s12 = smov 0   ;;  %s508_s13 = smov 0   ;;  %s564_s0 = inlined_call_operand.vmem [shape: f32[2,64,128], index: 0, kind: input, shape index: {}]   ;;  %s565_s1 = inlined_call_operand.vmem [shape: f32[2,1,128], index: 1, kind: input, shape index: {}]   ;;  %s566_s2 = inlined_call_operand.vmem [shape: f32[2,1,128], index: 2, kind: input, shape index: {}]   ;;  %s567_s3 = inlined_call_operand.vmem [shape: f32[2,64,128], index: 3, kind: output, shape index: {}]  }
   0x1   :  { %s510_s14 = smov 0  }
   0x2 LB: > { %s25_s15 = sadd.s32 1, %s480_s13  ;;  %p427_p0 = scmp.ge.s32.totalorder %s484_s14, 1  ;;  %s484_s14 = sphi %s510_s14, %s13_s14   ;;  %s480_s13 = sphi %s508_s13, %s569_s13   ;;  %s476_s12 = sphi %s506_s12, %s568_s12  }
   0x3   : > { %p27_p1 = scmp.ge.s32.totalorder %s25_s15, 2  ;;  %p174_p2 = scmp.lt.s32.totalorder %s484_s14, 3 }
   0x5   : > { %s571_s15 = smov (%p27_p1, %s25_s15), 0  ;;  %p175_p3 = pnand %p427_p0, %p174_p2 }
   0x6   : > { %p213_p4 = scmp.lt.s32.totalorder (!%p175_p3), %s476_s12, 1 }
   0x7   : > { %178 = sbr.rel (%p175_p3) target bundleno = 58 (0x3a), region = 32 }
   0xc   : > { %s573_s12 = smov (!%p213_p4, %s476_s12), 1 }
   0xd   : > { %s224_s18 = scalar_lea.vmem %s565_s1, %s573_s12  ;;  %s227_s21 = scalar_lea.vmem %s566_s2, %s573_s12 }
   0xe   : > { %v246_v0 = vld [vmem:[%s224_s18] sm:$0x1]  ;;  %s434_s22 = sshll.u32 %s573_s12, 6 }
   0xf   : > { %v247_v1 = vmul.f32 0.015625, %v246_v0  ;;  %v248_v2 = vld [vmem:[%s227_s21] sm:$0x1]  ;;  %s220_s25 = scalar_lea.vmem %s564_s0, %s434_s22  ;;  %s545_s28 = scalar_lea.vmem %s567_s3, %s434_s22 }
  0x10   : > { %v249_v3 = vmul.f32 0.015625, %v248_v2  ;;  %v238_v13 = vld [vmem:[%s220_s25] sm:$0xff]  ;;  %v239_v14 = vld [vmem:[%s220_s25 + $0x8] sm:$0xff]  ;;  %v240_v15 = vld [vmem:[%s220_s25 + $0x10] sm:$0xff] }
  0x11   : > { %v250_v4 = vmul.f32 %v247_v1, %v247_v1  ;;  %v254_v11 = vperm.slane %v247_v1, 0  ;;  %v241_v17 = vld [vmem:[%s220_s25 + $0x18] sm:$0xff]  ;;  %v242_v18 = vld [vmem:[%s220_s25 + $0x20] sm:$0xff]  ;;  %v243_v19 = vld [vmem:[%s220_s25 + $0x28] sm:$0xff] }
  0x12   : > { %v244_v20 = vld [vmem:[%s220_s25 + $0x30] sm:$0xff]  ;;  %v245_v21 = vld [vmem:[%s220_s25 + $0x38] sm:$0xff] }
  0x13   : > { %v251_v5 = vsub.f32 %v249_v3, %v250_v4  ;;  %v256_v22 = vsub.f32 %v238_v13, %v254_v11  ;;  %v257_v24 = vsub.f32 %v239_v14, %v254_v11  ;;  %v258_v25 = vsub.f32 %v240_v15, %v254_v11 }
  0x14   : > { %v259_v26 = vsub.f32 %v241_v17, %v254_v11  ;;  %v260_v27 = vsub.f32 %v242_v18, %v254_v11  ;;  %v261_v29 = vsub.f32 %v243_v19, %v254_v11  ;;  %v262_v30 = vsub.f32 %v244_v20, %v254_v11 }
  0x15   : > { %v252_v6 = vmax.f32 %v251_v5, 0.0  ;;  %v263_v31 = vsub.f32 %v245_v21, %v254_v11 }
  0x17   : > { %v264_v7 = vadd.f32 1e-05, %v252_v6 }
  0x19   : > { %460 = vrsqrt.f32 %v264_v7  ;;  %vm271_vm0 = vweird.f32 %v264_v7 }
  0x1f   : > { %v461_v8 = vpop.eup %460 }
  0x20   : > { %v266_v9 = vmul.f32 %v461_v8, %v264_v7  ;;  %vm272_vm1 = vweird.f32 %v461_v8 }
  0x21   : > { %vm273_vm2 = vmor %vm271_vm0, %vm272_vm1 }
  0x22   : > { %v267_v10 = vmul.f32 %v461_v8, %v266_v9 }
  0x24   : > { %v268_v12 = vmul.f32 0.5, %v267_v10 }
  0x26   : > { %v269_v16 = vsub.f32 1.5, %v268_v12 }
  0x28   : > { %v270_v23 = vmul.f32 %v461_v8, %v269_v16 }
  0x2a   : > { %v274_v28 = vsel %vm273_vm2, %v461_v8, %v270_v23 }
  0x2b   : > { %v276_v32 = vperm.slane %v274_v28, 0 }
  0x2d   : > { %v278_v33 = vmul.f32 %v276_v32, %v256_v22  ;;  %v279_v34 = vmul.f32 %v276_v32, %v257_v24  ;;  %v280_v35 = vmul.f32 %v276_v32, %v258_v25  ;;  %v281_v36 = vmul.f32 %v276_v32, %v259_v26 }
  0x2e   : > { %v282_v37 = vmul.f32 %v276_v32, %v260_v27  ;;  %v283_v38 = vmul.f32 %v276_v32, %v261_v29  ;;  %v284_v39 = vmul.f32 %v276_v32, %v262_v30  ;;  %v285_v40 = vmul.f32 %v276_v32, %v263_v31 }
  0x2f   : > { %vm286_vm3 = vcmp.gt.f32.partialorder %v278_v33, 0.0  ;;  %v294_v41 = vmul.f32 0.2, %v278_v33  ;;  %vm287_vm4 = vcmp.gt.f32.partialorder %v279_v34, 0.0  ;;  %v295_v42 = vmul.f32 0.2, %v279_v34 }
  0x30   : > { %vm288_vm5 = vcmp.gt.f32.partialorder %v280_v35, 0.0  ;;  %v296_v43 = vmul.f32 0.2, %v280_v35  ;;  %vm289_vm6 = vcmp.gt.f32.partialorder %v281_v36, 0.0  ;;  %v297_v44 = vmul.f32 0.2, %v281_v36 }
  0x31   : > { %v302_v45 = vsel %vm286_vm3, %v278_v33, %v294_v41  ;;  %v303_v46 = vsel %vm287_vm4, %v279_v34, %v295_v42  ;;  %vm290_vm7 = vcmp.gt.f32.partialorder %v282_v37, 0.0  ;;  %v298_v47 = vmul.f32 0.2, %v282_v37 }
  0x32   : > { %310 = vst [vmem:[%s545_s28] sm:$0xff] %v302_v45  ;;  %v304_v48 = vsel %vm288_vm5, %v280_v35, %v296_v43  ;;  %v305_v49 = vsel %vm289_vm6, %v281_v36, %v297_v44  ;;  %vm291_vm8 = vcmp.gt.f32.partialorder %v283_v38, 0.0  ;;  %v299_v50 = vmul.f32 0.2, %v283_v38 }
  0x33   : > { %311 = vst [vmem:[%s545_s28 + $0x8] sm:$0xff] %v303_v46  ;;  %v306_v51 = vsel %vm290_vm7, %v282_v37, %v298_v47  ;;  %vm292_vm9 = vcmp.gt.f32.partialorder %v284_v39, 0.0  ;;  %v300_v52 = vmul.f32 0.2, %v284_v39  ;;  %vm293_vm10 = vcmp.gt.f32.partialorder %v285_v40, 0.0 }
  0x34   : > { %312 = vst [vmem:[%s545_s28 + $0x10] sm:$0xff] %v304_v48  ;;  %v307_v53 = vsel %vm291_vm8, %v283_v38, %v299_v50  ;;  %v301_v54 = vmul.f32 0.2, %v285_v40 }
  0x35   : > { %313 = vst [vmem:[%s545_s28 + $0x18] sm:$0xff] %v305_v49  ;;  %v308_v55 = vsel %vm292_vm9, %v284_v39, %v300_v52 }
  0x36   : > { %314 = vst [vmem:[%s545_s28 + $0x20] sm:$0xff] %v306_v51  ;;  %v309_v56 = vsel %vm293_vm10, %v285_v40, %v301_v54 }
  0x37   : > { %315 = vst [vmem:[%s545_s28 + $0x28] sm:$0xff] %v307_v53 }
  0x38   : > { %316 = vst [vmem:[%s545_s28 + $0x30] sm:$0xff] %v308_v55 }
  0x39   : > { %317 = vst [vmem:[%s545_s28 + $0x38] sm:$0xff] %v309_v56 }
  0x3a PF: > { %s13_s14 = sadd.s32 1, %s484_s14   ;;  %s568_s12 = smov %s480_s13 }
  0x3b   : > { %p10_p5 = scmp.ge.s32.totalorder %s13_s14, 4   ;;  %s569_s13 = smov %s571_s15 }
  0x3d   :  { %12 = sbr.rel (!%p10_p5) target bundleno = 2 (0x2), region = 68 }

// kernel: _lambda_.11
= control target key start
LH: loop header
LB: loop body
LE: loop exit
PB: predicated region body
PF: predicated region fallthrough
CT: control target
= control target key end

     0   :  { %s810_s18 = smov 0   ;;  %s812_s19 = smov 0   ;;  %s915_s0 = inlined_call_operand.vmem [shape: bf16[2,16,256], index: 0, kind: input, shape index: {}]   ;;  %s916_s1 = inlined_call_operand.vmem [shape: bf16[256,128], index: 1, kind: input, shape index: {}]   ;;  %s917_s2 = inlined_call_operand.vmem [shape: f32[1,128], index: 2, kind: input, shape index: {}]   ;;  %s918_s3 = inlined_call_operand.vmem [shape: f32[2,16,128], index: 3, kind: output, shape index: {0}]   ;;  %s919_s4 = inlined_call_operand.vmem [shape: f32[2,1,128], index: 4, kind: output, shape index: {1}]   ;;  %s920_s5 = inlined_call_operand.vmem [shape: f32[2,1,128], index: 5, kind: output, shape index: {2}]  }
   0x1   :  { %s814_s20 = smov 0  }
   0x2 LB: > { %s28_s21 = sadd.s32 1, %s773_s19  ;;  %p630_p0 = scmp.ge.s32.totalorder %s777_s20, 1  ;;  %s777_s20 = sphi %s814_s20, %s16_s20   ;;  %s773_s19 = sphi %s812_s19, %s922_s19   ;;  %s769_s18 = sphi %s810_s18, %s921_s18  }
   0x3   : > { %p30_p1 = scmp.ge.s32.totalorder %s28_s21, 2  ;;  %p214_p2 = scmp.lt.s32.totalorder %s777_s20, 3 }
   0x5   : > { %s924_s21 = smov (%p30_p1, %s28_s21), 0  ;;  %p215_p3 = pnand %p630_p0, %p214_p2 }
   0x6   : > { %p258_p4 = scmp.lt.s32.totalorder (!%p215_p3), %s769_s18, 1 }
   0x7   : > { %218 = sbr.rel (%p215_p3) target bundleno = 201 (0xc9), region = 32 }
   0xc   : > { %v720_v0 = vld [vmem:[%s916_s1 + $0x38] sm:$0xff]  ;;  %v719_v2 = vld [vmem:[%s916_s1 + $0x30] sm:$0xff]  ;;  %s926_s18 = smov (!%p258_p4, %s769_s18), 1  ;;  %v779_v4 = vmov 0.0   ;;  %v718_v5 = vld [vmem:[%s916_s1 + $0x28] sm:$0xff] }
   0xd   : > { %v728_v1 = vld [vmem:[%s916_s1 + $0x78] sm:$0xff]  ;;  %434 = vmatpush.bf16.msra.mxu0 %v720_v0  ;;  %v727_v3 = vld [vmem:[%s916_s1 + $0x70] sm:$0xff]  ;;  %s846_s7 = scalar_lea.vmem %s920_s5, %s926_s18  ;;  %v726_v6 = vld [vmem:[%s916_s1 + $0x68] sm:$0xff]  ;;  %s709_s28 = sshll.u32 %s926_s18, 4 }
   0xe   : > { %448 = vmatpush.bf16.msra.mxu1 %v728_v1  ;;  %289 = vst [vmem:[%s846_s7] sm:$0x1] %v779_v4  ;;  %v717_v7 = vld [vmem:[%s916_s1 + $0x20] sm:$0xff]  ;;  %v716_v9 = vld [vmem:[%s916_s1 + $0x18] sm:$0xff]  ;;  %v715_v11 = vld [vmem:[%s916_s1 + $0x10] sm:$0xff]  ;;  %s266_s11 = scalar_lea.vmem %s915_s0, %s709_s28  ;;  %s893_s22 = scalar_lea.vmem %s919_s4, %s926_s18 }
   0xf   : > { %v725_v8 = vld [vmem:[%s916_s1 + $0x60] sm:$0xff]  ;;  %v724_v10 = vld [vmem:[%s916_s1 + $0x58] sm:$0xff]  ;;  %v723_v12 = vld [vmem:[%s916_s1 + $0x50] sm:$0xff]  ;;  %288 = vst [vmem:[%s893_s22] sm:$0x1] %v779_v4  ;;  %s276_s27 = scalar_lea.vmem %s918_s3, %s709_s28 }
  0x10   : > { %v714_v13 = vld [vmem:[%s916_s1 + $0x8] sm:$0xff]  ;;  %v713_v15 = vld [vmem:[%s916_s1] sm:$0xff] }
  0x11   : > { %435 = vmatpush.bf16.msra.mxu0 %v719_v2  ;;  %v722_v14 = vld [vmem:[%s916_s1 + $0x48] sm:$0xff]  ;;  %v721_v16 = vld [vmem:[%s916_s1 + $0x40] sm:$0xff] }
  0x12   : > { %449 = vmatpush.bf16.msra.mxu1 %v727_v3  ;;  %v637_v17 = vld [vmem:[%s266_s11] sm:$0xf]  ;;  %v712_v18 = vld [vmem:[%s266_s11 + $0x4] sm:$0xf0]  ;;  %v711_v19 = vld [vmem:[%s266_s11 + $0x4] sm:$0xf] }
  0x13   : > { %v639_v20 = vld [vmem:[%s266_s11 + $0x8] sm:$0xf0]  ;;  %v638_v21 = vor.u32 %v712_v18, %v637_v17  ;;  %v754_v23 = vld [vmem:[%s917_s2] ss:$0 sm:$0xff] }
  0x14   : > { %v642_v22 = vor.u32 %v711_v19, %v639_v20 }
  0x15   : > { %436 = vmatpush.bf16.msra.mxu0 %v718_v5  ;;  %v474_v48 = vld [vmem:[%s846_s7] sm:$0x1] }
  0x16   : > { %450 = vmatpush.bf16.msra.mxu1 %v726_v6  ;;  %v464_v45 = vld [vmem:[%s893_s22] sm:$0x1] }
  0x19   : > { %437 = vmatpush.bf16.msra.mxu0 %v717_v7 }
  0x1a   : > { %451 = vmatpush.bf16.msra.mxu1 %v725_v8 }
  0x1d   : > { %438 = vmatpush.bf16.msra.mxu0 %v716_v9 }
  0x1e   : > { %452 = vmatpush.bf16.msra.mxu1 %v724_v10 }
  0x21   : > { %439 = vmatpush.bf16.msra.mxu0 %v715_v11 }
  0x22   : > { %453 = vmatpush.bf16.msra.mxu1 %v723_v12 }
  0x25   : > { %440 = vmatpush.bf16.msra.mxu0 %v714_v13 }
  0x26   : > { %454 = vmatpush.bf16.msra.mxu1 %v722_v14 }
  0x29   : > { %441 = vmatpush.bf16.msra.mxu0 %v713_v15 }
  0x2a   : > { %455 = vmatpush.bf16.msra.mxu1 %v721_v16 }
  0x2c   : > { %442 = vmatmul.bf16.vlgmr.msra.gmra.mxu0 %v638_v21 }
  0x2d   : > { %456 = vmatmul.bf16.vlgmr.msra.gmra.mxu1 %v642_v22 }
  0xa9   : > { %v443_v24 = vpop.f32.mrf.mxu0 }
  0xaa   : > { %v457_v25 = vpop.f32.mrf.mxu1  ;;  %v444_v26 = vadd.f32 %v754_v23, %v443_v24 }
  0xac   : > { %v458_v27 = vadd.f32 %v457_v25, %v444_v26 }
  0xae   : > { %462 = vst [vmem:[%s276_s27] sm:$0xff] %v458_v27  ;;  %v475_v32 = vmul.f32 %v458_v27, %v458_v27 }
  0xb1   : > { %v445_v28 = vpop.f32.mrf.mxu0 }
  0xb2   : > { %v446_v29 = vadd.f32 %v754_v23, %v445_v28  ;;  %v459_v30 = vpop.f32.mrf.mxu1 }
  0xb4   : > { %v460_v31 = vadd.f32 %v459_v30, %v446_v29 }
  0xb6   : > { %463 = vst [vmem:[%s276_s27 + $0x8] sm:$0xff] %v460_v31  ;;  %v465_v33 = vadd.f32 %v460_v31, %v458_v27  ;;  %v476_v34 = vmul.f32 %v460_v31, %v460_v31 }
  0xb8   : > { %v466_v35 = vrot.slane %v465_v33, 4  ;;  %v477_v36 = vadd.f32 %v476_v34, %v475_v32 }
  0xba   : > { %v467_v37 = vadd.f32 %v466_v35, %v465_v33  ;;  %v478_v38 = vrot.slane %v477_v36, 4 }
  0xbc   : > { %v468_v39 = vrot.slane %v467_v37, 2  ;;  %v479_v40 = vadd.f32 %v478_v38, %v477_v36 }
  0xbe   : > { %v469_v41 = vadd.f32 %v468_v39, %v467_v37  ;;  %v480_v42 = vrot.slane %v479_v40, 2 }
  0xc0   : > { %v470_v43 = vrot.slane %v469_v41, 1  ;;  %v481_v44 = vadd.f32 %v480_v42, %v479_v40 }
  0xc2   : > { %v471_v46 = vadd.f32 %v470_v43, %v469_v41  ;;  %v482_v47 = vrot.slane %v481_v44, 1 }
  0xc4   : > { %v472_v49 = vadd.f32 %v471_v46, %v464_v45  ;;  %v483_v50 = vadd.f32 %v482_v47, %v481_v44 }
  0xc6   : > { %473 = vst [vmem:[%s893_s22] sm:$0x1] %v472_v49  ;;  %v484_v51 = vadd.f32 %v483_v50, %v474_v48 }
  0xc8   : > { %485 = vst [vmem:[%s846_s7] sm:$0x1] %v484_v51 }
  0xc9 PF: > { %s16_s20 = sadd.s32 1, %s777_s20   ;;  %s921_s18 = smov %s773_s19 }
  0xca   : > { %p13_p5 = scmp.ge.s32.totalorder %s16_s20, 4   ;;  %s922_s19 = smov %s924_s21 }
  0xcc   :  { %15 = sbr.rel (!%p13_p5) target bundleno = 2 (0x2), region = 90 }

// kernel: _lambda_.12
= control target key start
LH: loop header
LB: loop body
LE: loop exit
PB: predicated region body
PF: predicated region fallthrough
CT: control target
= control target key end

     0   :  { %s464_s12 = smov 0   ;;  %s466_s13 = smov 0   ;;  %s508_s0 = inlined_call_operand.vmem [shape: f32[2,16,128], index: 0, kind: input, shape index: {}]   ;;  %s509_s1 = inlined_call_operand.vmem [shape: f32[2,1,128], index: 1, kind: input, shape index: {}]   ;;  %s510_s2 = inlined_call_operand.vmem [shape: f32[2,1,128], index: 2, kind: input, shape index: {}]   ;;  %s511_s3 = inlined_call_operand.vmem [shape: f32[2,16,128], index: 3, kind: output, shape index: {}]  }
   0x1   :  { %s468_s14 = smov 0  }
   0x2 LB: > { %s25_s15 = sadd.s32 1, %s438_s13  ;;  %p385_p0 = scmp.ge.s32.totalorder %s442_s14, 1  ;;  %s442_s14 = sphi %s468_s14, %s13_s14   ;;  %s438_s13 = sphi %s466_s13, %s513_s13   ;;  %s434_s12 = sphi %s464_s12, %s512_s12  }
   0x3   : > { %p27_p1 = scmp.ge.s32.totalorder %s25_s15, 2  ;;  %p174_p2 = scmp.lt.s32.totalorder %s442_s14, 3 }
   0x5   : > { %s515_s15 = smov (%p27_p1, %s25_s15), 0  ;;  %p175_p3 = pnand %p385_p0, %p174_p2 }
   0x6   : > { %p213_p4 = scmp.lt.s32.totalorder (!%p175_p3), %s434_s12, 1 }
   0x7   : > { %178 = sbr.rel (%p175_p3) target bundleno = 52 (0x34), region = 32 }
   0xc   : > { %s517_s12 = smov (!%p213_p4, %s434_s12), 1 }
   0xd   : > { %s224_s18 = scalar_lea.vmem %s509_s1, %s517_s12  ;;  %s227_s21 = scalar_lea.vmem %s510_s2, %s517_s12 }
   0xe   : > { %v240_v0 = vld [vmem:[%s224_s18] sm:$0x1]  ;;  %s392_s22 = sshll.u32 %s517_s12, 4 }
   0xf   : > { %v241_v1 = vmul.f32 0.0625, %v240_v0  ;;  %v242_v2 = vld [vmem:[%s227_s21] sm:$0x1]  ;;  %s220_s25 = scalar_lea.vmem %s508_s0, %s392_s22  ;;  %s236_s28 = scalar_lea.vmem %s511_s3, %s392_s22 }
  0x10   : > { %v243_v3 = vmul.f32 0.0625, %v242_v2  ;;  %v238_v13 = vld [vmem:[%s220_s25] sm:$0xff]  ;;  %v239_v14 = vld [vmem:[%s220_s25 + $0x8] sm:$0xff] }
  0x11   : > { %v244_v4 = vmul.f32 %v241_v1, %v241_v1  ;;  %v248_v12 = vperm.slane %v241_v1, 0 }
  0x13   : > { %v245_v5 = vsub.f32 %v243_v3, %v244_v4  ;;  %v250_v17 = vsub.f32 %v238_v13, %v248_v12  ;;  %v251_v18 = vsub.f32 %v239_v14, %v248_v12 }
  0x15   : > { %v246_v6 = vmax.f32 %v245_v5, 0.0 }
  0x17   : > { %v252_v7 = vadd.f32 1e-05, %v246_v6 }
  0x19   : > { %418 = vrsqrt.f32 %v252_v7  ;;  %vm259_vm0 = vweird.f32 %v252_v7 }
  0x1f   : > { %v419_v8 = vpop.eup %418 }
  0x20   : > { %v254_v9 = vmul.f32 %v419_v8, %v252_v7  ;;  %vm260_vm1 = vweird.f32 %v419_v8 }
  0x21   : > { %vm261_vm2 = vmor %vm259_vm0, %vm260_vm1 }
  0x22   : > { %v255_v10 = vmul.f32 %v419_v8, %v254_v9 }
  0x24   : > { %v256_v11 = vmul.f32 0.5, %v255_v10 }
  0x26   : > { %v257_v15 = vsub.f32 1.5, %v256_v11 }
  0x28   : > { %v258_v16 = vmul.f32 %v419_v8, %v257_v15 }
  0x2a   : > { %v262_v19 = vsel %vm261_vm2, %v419_v8, %v258_v16 }
  0x2b   : > { %v264_v20 = vperm.slane %v262_v19, 0 }
  0x2d   : > { %v266_v21 = vmul.f32 %v264_v20, %v250_v17  ;;  %v267_v22 = vmul.f32 %v264_v20, %v251_v18 }
  0x2f   : > { %vm268_vm3 = vcmp.gt.f32.partialorder %v266_v21, 0.0  ;;  %v270_v23 = vmul.f32 0.2, %v266_v21  ;;  %vm269_vm4 = vcmp.gt.f32.partialorder %v267_v22, 0.0  ;;  %v271_v24 = vmul.f32 0.2, %v267_v22 }
  0x31   : > { %v272_v25 = vsel %vm268_vm3, %v266_v21, %v270_v23  ;;  %v273_v26 = vsel %vm269_vm4, %v267_v22, %v271_v24 }
  0x32   : > { %274 = vst [vmem:[%s236_s28] sm:$0xff] %v272_v25 }
  0x33   : > { %275 = vst [vmem:[%s236_s28 + $0x8] sm:$0xff] %v273_v26 }
  0x34 PF: > { %s13_s14 = sadd.s32 1, %s442_s14   ;;  %s512_s12 = smov %s438_s13 }
  0x35   : > { %p10_p5 = scmp.ge.s32.totalorder %s13_s14, 4   ;;  %s513_s13 = smov %s515_s15 }
  0x37   :  { %12 = sbr.rel (!%p10_p5) target bundleno = 2 (0x2), region = 68 }

// kernel: _lambda_.14
= control target key start
LH: loop header
LB: loop body
LE: loop exit
PB: predicated region body
PF: predicated region fallthrough
CT: control target
= control target key end

     0   :  { %s464_s12 = smov 0   ;;  %s466_s13 = smov 0   ;;  %s508_s0 = inlined_call_operand.vmem [shape: f32[2,9,128], index: 0, kind: input, shape index: {}]   ;;  %s509_s1 = inlined_call_operand.vmem [shape: f32[2,1,128], index: 1, kind: input, shape index: {}]   ;;  %s510_s2 = inlined_call_operand.vmem [shape: f32[2,1,128], index: 2, kind: input, shape index: {}]   ;;  %s511_s3 = inlined_call_operand.vmem [shape: f32[2,9,128], index: 3, kind: output, shape index: {}]  }
   0x1   :  { %s468_s14 = smov 0  }
   0x2 LB: > { %s25_s15 = sadd.s32 1, %s438_s13  ;;  %p385_p0 = scmp.ge.s32.totalorder %s442_s14, 1  ;;  %s442_s14 = sphi %s468_s14, %s13_s14   ;;  %s438_s13 = sphi %s466_s13, %s513_s13   ;;  %s434_s12 = sphi %s464_s12, %s512_s12  }
   0x3   : > { %p27_p1 = scmp.ge.s32.totalorder %s25_s15, 2  ;;  %p174_p2 = scmp.lt.s32.totalorder %s442_s14, 3 }
   0x5   : > { %s515_s15 = smov (%p27_p1, %s25_s15), 0  ;;  %p175_p3 = pnand %p385_p0, %p174_p2 }
   0x6   : > { %p213_p4 = scmp.lt.s32.totalorder (!%p175_p3), %s434_s12, 1 }
   0x7   : > { %178 = sbr.rel (%p175_p3) target bundleno = 52 (0x34), region = 32 }
   0xc   : > { %s517_s12 = smov (!%p213_p4, %s434_s12), 1 }
   0xd   : > { %s224_s18 = scalar_lea.vmem %s509_s1, %s517_s12  ;;  %s227_s21 = scalar_lea.vmem %s510_s2, %s517_s12 }
   0xe   : > { %v240_v0 = vld [vmem:[%s224_s18] sm:$0x1]  ;;  %s392_s22 = sshll.u32 %s517_s12, 4 }
   0xf   : > { %v241_v1 = vmul.f32 0.11111111, %v240_v0  ;;  %v242_v2 = vld [vmem:[%s227_s21] sm:$0x1]  ;;  %s220_s25 = scalar_lea.vmem %s508_s0, %s392_s22  ;;  %s236_s28 = scalar_lea.vmem %s511_s3, %s392_s22 }
  0x10   : > { %v243_v3 = vmul.f32 0.11111111, %v242_v2  ;;  %v238_v13 = vld [vmem:[%s220_s25] sm:$0xff]  ;;  %v239_v14 = vld [vmem:[%s220_s25 + $0x8] sm:$0x1] }
  0x11   : > { %v244_v4 = vmul.f32 %v241_v1, %v241_v1  ;;  %v248_v12 = vperm.slane %v241_v1, 0 }
  0x13   : > { %v245_v5 = vsub.f32 %v243_v3, %v244_v4  ;;  %v250_v17 = vsub.f32 %v238_v13, %v248_v12  ;;  %v251_v18 = vsub.f32 %v239_v14, %v248_v12 }
  0x15   : > { %v246_v6 = vmax.f32 %v245_v5, 0.0 }
  0x17   : > { %v252_v7 = vadd.f32 1e-05, %v246_v6 }
  0x19   : > { %418 = vrsqrt.f32 %v252_v7  ;;  %vm259_vm0 = vweird.f32 %v252_v7 }
  0x1f   : > { %v419_v8 = vpop.eup %418 }
  0x20   : > { %v254_v9 = vmul.f32 %v419_v8, %v252_v7  ;;  %vm260_vm1 = vweird.f32 %v419_v8 }
  0x21   : > { %vm261_vm2 = vmor %vm259_vm0, %vm260_vm1 }
  0x22   : > { %v255_v10 = vmul.f32 %v419_v8, %v254_v9 }
  0x24   : > { %v256_v11 = vmul.f32 0.5, %v255_v10 }
  0x26   : > { %v257_v15 = vsub.f32 1.5, %v256_v11 }
  0x28   : > { %v258_v16 = vmul.f32 %v419_v8, %v257_v15 }
  0x2a   : > { %v262_v19 = vsel %vm261_vm2, %v419_v8, %v258_v16 }
  0x2b   : > { %v264_v20 = vperm.slane %v262_v19, 0 }
  0x2d   : > { %v266_v21 = vmul.f32 %v264_v20, %v250_v17  ;;  %v267_v22 = vmul.f32 %v264_v20, %v251_v18 }
  0x2f   : > { %vm268_vm3 = vcmp.gt.f32.partialorder %v266_v21, 0.0  ;;  %v270_v23 = vmul.f32 0.2, %v266_v21  ;;  %vm269_vm4 = vcmp.gt.f32.partialorder %v267_v22, 0.0  ;;  %v271_v24 = vmul.f32 0.2, %v267_v22 }
  0x31   : > { %v272_v25 = vsel %vm268_vm3, %v266_v21, %v270_v23  ;;  %v273_v26 = vsel %vm269_vm4, %v267_v22, %v271_v24 }
  0x32   : > { %274 = vst [vmem:[%s236_s28] sm:$0xff] %v272_v25 }
  0x33   : > { %275 = vst [vmem:[%s236_s28 + $0x8] sm:$0x1] %v273_v26 }
  0x34 PF: > { %s13_s14 = sadd.s32 1, %s442_s14   ;;  %s512_s12 = smov %s438_s13 }
  0x35   : > { %p10_p5 = scmp.ge.s32.totalorder %s13_s14, 4   ;;  %s513_s13 = smov %s515_s15 }
  0x37   :  { %12 = sbr.rel (!%p10_p5) target bundleno = 2 (0x2), region = 68 }

// kernel: _lambda_.13
= control target key start
LH: loop header
LB: loop body
LE: loop exit
PB: predicated region body
PF: predicated region fallthrough
CT: control target
= control target key end

     0   :  { %s1071_s18 = smov 0   ;;  %s1073_s19 = smov 0   ;;  %s1229_s0 = inlined_call_operand.vmem [shape: bf16[2,9,512], index: 0, kind: input, shape index: {}]   ;;  %s1230_s1 = inlined_call_operand.vmem [shape: bf16[512,128], index: 1, kind: input, shape index: {}]   ;;  %s1231_s2 = inlined_call_operand.vmem [shape: f32[1,128], index: 2, kind: input, shape index: {}]   ;;  %s1232_s3 = inlined_call_operand.vmem [shape: f32[2,9,128], index: 3, kind: output, shape index: {0}]   ;;  %s1233_s4 = inlined_call_operand.vmem [shape: f32[2,1,128], index: 4, kind: output, shape index: {1}]   ;;  %s1234_s5 = inlined_call_operand.vmem [shape: f32[2,1,128], index: 5, kind: output, shape index: {2}]  }
   0x1   :  { %s1075_s20 = smov 0  }
   0x2 LB: > { %s28_s21 = sadd.s32 1, %s1034_s19  ;;  %p801_p0 = scmp.ge.s32.totalorder %s1038_s20, 1  ;;  %s1038_s20 = sphi %s1075_s20, %s16_s20   ;;  %s1034_s19 = sphi %s1073_s19, %s1236_s19   ;;  %s1030_s18 = sphi %s1071_s18, %s1235_s18  }
   0x3   : > { %p30_p1 = scmp.ge.s32.totalorder %s28_s21, 2  ;;  %p214_p2 = scmp.lt.s32.totalorder %s1038_s20, 3 }
   0x5   : > { %s1238_s21 = smov (%p30_p1, %s28_s21), 0  ;;  %p215_p3 = pnand %p801_p0, %p214_p2 }
   0x6   : > { %p258_p4 = scmp.lt.s32.totalorder (!%p215_p3), %s1030_s18, 1 }
   0x7   : > { %218 = sbr.rel (%p215_p3) target bundleno = 210 (0xd2), region = 32 }
   0xc   : > { %v965_v0 = vld [vmem:[%s1230_s1 + $0x38] sm:$0xff]  ;;  %v964_v4 = vld [vmem:[%s1230_s1 + $0x30] sm:$0xff]  ;;  %v963_v8 = vld [vmem:[%s1230_s1 + $0x28] sm:$0xff]  ;;  %s1240_s18 = smov (!%p258_p4, %s1030_s18), 1  ;;  %v1040_v44 = vmov 0.0   ;;  %vm633_vm0 = vcmask 1040384  }
   0xd   : > { %v973_v1 = vld [vmem:[%s1230_s1 + $0x78] sm:$0xff]  ;;  %574 = vmatpush.bf16.msra.mxu0 %v965_v0  ;;  %v972_v5 = vld [vmem:[%s1230_s1 + $0x70] sm:$0xff]  ;;  %v971_v9 = vld [vmem:[%s1230_s1 + $0x68] sm:$0xff]  ;;  %s952_s28 = sshll.u32 %s1240_s18, 5  ;;  %s1199_s29 = scalar_lea.vmem %s1233_s4, %s1240_s18 }
   0xe   : > { %v981_v2 = vld [vmem:[%s1230_s1 + $0xb8] sm:$0xff]  ;;  %588 = vmatpush.bf16.msra.mxu1 %v973_v1  ;;  %v980_v6 = vld [vmem:[%s1230_s1 + $0xb0] sm:$0xff]  ;;  %v979_v10 = vld [vmem:[%s1230_s1 + $0xa8] sm:$0xff]  ;;  %s266_s10 = scalar_lea.vmem %s1229_s0, %s952_s28  ;;  %s1205_s7 = scalar_lea.vmem %s1234_s5, %s1240_s18  ;;  %288 = vst [vmem:[%s1199_s29] sm:$0x1] %v1040_v44 }
   0xf   : > { %v989_v3 = vld [vmem:[%s1230_s1 + $0xf8] sm:$0xff]  ;;  %602 = vmatpush.bf16.msra.mxu2 %v981_v2  ;;  %v988_v7 = vld [vmem:[%s1230_s1 + $0xf0] sm:$0xff]  ;;  %v987_v11 = vld [vmem:[%s1230_s1 + $0xe8] sm:$0xff]  ;;  %289 = vst [vmem:[%s1205_s7] sm:$0x1] %v1040_v44 }
  0x10   : > { %616 = vmatpush.bf16.msra.mxu3 %v989_v3  ;;  %v962_v12 = vld [vmem:[%s1230_s1 + $0x20] sm:$0xff]  ;;  %v961_v16 = vld [vmem:[%s1230_s1 + $0x18] sm:$0xff]  ;;  %v960_v20 = vld [vmem:[%s1230_s1 + $0x10] sm:$0xff] }
  0x11   : > { %575 = vmatpush.bf16.msra.mxu0 %v964_v4  ;;  %v970_v13 = vld [vmem:[%s1230_s1 + $0x60] sm:$0xff]  ;;  %v969_v17 = vld [vmem:[%s1230_s1 + $0x58] sm:$0xff]  ;;  %v968_v21 = vld [vmem:[%s1230_s1 + $0x50] sm:$0xff] }
  0x12   : > { %589 = vmatpush.bf16.msra.mxu1 %v972_v5  ;;  %v978_v14 = vld [vmem:[%s1230_s1 + $0xa0] sm:$0xff]  ;;  %v977_v18 = vld [vmem:[%s1230_s1 + $0x98] sm:$0xff]  ;;  %v976_v22 = vld [vmem:[%s1230_s1 + $0x90] sm:$0xff] }
  0x13   : > { %603 = vmatpush.bf16.msra.mxu2 %v980_v6  ;;  %v986_v15 = vld [vmem:[%s1230_s1 + $0xe0] sm:$0xff]  ;;  %v985_v19 = vld [vmem:[%s1230_s1 + $0xd8] sm:$0xff]  ;;  %v984_v23 = vld [vmem:[%s1230_s1 + $0xd0] sm:$0xff] }
  0x14   : > { %617 = vmatpush.bf16.msra.mxu3 %v988_v7  ;;  %v959_v24 = vld [vmem:[%s1230_s1 + $0x8] sm:$0xff]  ;;  %v958_v28 = vld [vmem:[%s1230_s1] sm:$0xff]  ;;  %v956_v33 = vld [vmem:[%s266_s10 + $0xc] sm:$0x10] }
  0x15   : > { %576 = vmatpush.bf16.msra.mxu0 %v963_v8  ;;  %v967_v25 = vld [vmem:[%s1230_s1 + $0x48] sm:$0xff]  ;;  %v966_v29 = vld [vmem:[%s1230_s1 + $0x40] sm:$0xff]  ;;  %v810_v35 = vld [vmem:[%s266_s10 + $0x10] sm:$0x10] }
  0x16   : > { %590 = vmatpush.bf16.msra.mxu1 %v971_v9  ;;  %v975_v26 = vld [vmem:[%s1230_s1 + $0x88] sm:$0xff]  ;;  %v974_v30 = vld [vmem:[%s1230_s1 + $0x80] sm:$0xff]  ;;  %v957_v37 = vld [vmem:[%s266_s10 + $0x14] sm:$0x10] }
  0x17   : > { %604 = vmatpush.bf16.msra.mxu2 %v979_v10  ;;  %v983_v27 = vld [vmem:[%s1230_s1 + $0xc8] sm:$0xff]  ;;  %v982_v31 = vld [vmem:[%s1230_s1 + $0xc0] sm:$0xff]  ;;  %v818_v39 = vld [vmem:[%s266_s10 + $0x18] sm:$0x10] }
  0x18   : > { %618 = vmatpush.bf16.msra.mxu3 %v987_v11  ;;  %v808_v32 = vld [vmem:[%s266_s10] sm:$0xf]  ;;  %v954_v34 = vld [vmem:[%s266_s10 + $0x4] sm:$0xf]  ;;  %v816_v36 = vld [vmem:[%s266_s10 + $0x8] sm:$0xf] }
  0x19   : > { %577 = vmatpush.bf16.msra.mxu0 %v962_v12  ;;  %v955_v38 = vld [vmem:[%s266_s10 + $0xc] sm:$0xf]  ;;  %v809_v40 = vor.u32 %v956_v33, %v808_v32  ;;  %v813_v41 = vor.u32 %v954_v34, %v810_v35  ;;  %v817_v42 = vor.u32 %v957_v37, %v816_v36  ;;  %v1015_v45 = vld [vmem:[%s1231_s2] ss:$0 sm:$0xff]  ;;  %s953_s10 = sshll.u32 %s1240_s18, 4 }
  0x1a   : > { %591 = vmatpush.bf16.msra.mxu1 %v970_v13  ;;  %v821_v43 = vor.u32 %v955_v38, %v818_v39  ;;  %s276_s13 = scalar_lea.vmem %s1232_s3, %s953_s10  ;;  %v632_v13 = vld [vmem:[%s1199_s29] sm:$0x1] }
  0x1b   : > { %605 = vmatpush.bf16.msra.mxu2 %v978_v14 }
  0x1c   : > { %619 = vmatpush.bf16.msra.mxu3 %v986_v15 }
  0x1d   : > { %578 = vmatpush.bf16.msra.mxu0 %v961_v16  ;;  %v644_v16 = vld [vmem:[%s1205_s7] sm:$0x1] }
  0x1e   : > { %592 = vmatpush.bf16.msra.mxu1 %v969_v17 }
  0x1f   : > { %606 = vmatpush.bf16.msra.mxu2 %v977_v18 }
  0x20   : > { %620 = vmatpush.bf16.msra.mxu3 %v985_v19 }
  0x21   : > { %579 = vmatpush.bf16.msra.mxu0 %v960_v20 }
  0x22   : > { %593 = vmatpush.bf16.msra.mxu1 %v968_v21 }
  0x23   : > { %607 = vmatpush.bf16.msra.mxu2 %v976_v22 }
  0x24   : > { %621 = vmatpush.bf16.msra.mxu3 %v984_v23 }
  0x25   : > { %580 = vmatpush.bf16.msra.mxu0 %v959_v24 }
  0x26   : > { %594 = vmatpush.bf16.msra.mxu1 %v967_v25 }
  0x27   : > { %608 = vmatpush.bf16.msra.mxu2 %v975_v26 }
  0x28   : > { %622 = vmatpush.bf16.msra.mxu3 %v983_v27 }
  0x29   : > { %581 = vmatpush.bf16.msra.mxu0 %v958_v28 }
  0x2a   : > { %595 = vmatpush.bf16.msra.mxu1 %v966_v29 }
  0x2b   : > { %609 = vmatpush.bf16.msra.mxu2 %v974_v30 }
  0x2c   : > { %623 = vmatpush.bf16.msra.mxu3 %v982_v31  ;;  %582 = vmatmul.bf16.vlgmr.msra.gmra.mxu0 %v809_v40 }
  0x2d   : > { %596 = vmatmul.bf16.vlgmr.msra.gmra.mxu1 %v813_v41 }
  0x2e   : > { %610 = vmatmul.bf16.vlgmr.msra.gmra.mxu2 %v817_v42 }
  0x2f   : > { %624 = vmatmul.bf16.vlgmr.msra.gmra.mxu3 %v821_v43 }
  0xa9   : > { %v583_v46 = vpop.f32.mrf.mxu0 }
  0xaa   : > { %v584_v47 = vadd.f32 %v1015_v45, %v583_v46  ;;  %v597_v48 = vpop.f32.mrf.mxu1 }
  0xac   : > { %v598_v49 = vadd.f32 %v597_v48, %v584_v47 }
  0xb1   : > { %v611_v50 = vpop.f32.mrf.mxu2  ;;  %v585_v53 = vpop.f32.mrf.mxu0 }
  0xb2   : > { %v625_v51 = vpop.f32.mrf.mxu3  ;;  %v612_v52 = vadd.f32 %v611_v50, %v598_v49  ;;  %v586_v55 = vadd.f32 %v1015_v45, %v585_v53  ;;  %v599_v56 = vpop.f32.mrf.mxu1 }
  0xb4   : > { %v626_v54 = vadd.f32 %v625_v51, %v612_v52  ;;  %v600_v57 = vadd.f32 %v599_v56, %v586_v55 }
  0xb6   : > { %630 = vst [vmem:[%s276_s13] sm:$0xff] %v626_v54  ;;  %v645_v0 = vmul.f32 %v626_v54, %v626_v54 }
  0xb9   : > { %v613_v58 = vpop.f32.mrf.mxu2 }
  0xba   : > { %v614_v59 = vadd.f32 %v613_v58, %v600_v57  ;;  %v627_v60 = vpop.f32.mrf.mxu3 }
  0xbc   : > { %v628_v61 = vadd.f32 %v627_v60, %v614_v59 }
  0xbe   : > { %631 = vst [vmem:[%s276_s13 + $0x8] sm:$0x1] %v628_v61  ;;  %v634_v62 = vsel %vm633_vm0, %v628_v61, 0.0  ;;  %v646_v63 = vmul.f32 %v628_v61, %v628_v61 }
  0xbf   : > { %v635_v1 = vadd.f32 %v634_v62, %v626_v54 }
  0xc0   : > { %v647_v2 = vsel %vm633_vm0, %v646_v63, 0.0 }
  0xc1   : > { %v636_v3 = vrot.slane %v635_v1, 4  ;;  %v648_v4 = vadd.f32 %v647_v2, %v645_v0 }
  0xc3   : > { %v637_v5 = vadd.f32 %v636_v3, %v635_v1  ;;  %v649_v6 = vrot.slane %v648_v4, 4 }
  0xc5   : > { %v638_v7 = vrot.slane %v637_v5, 2  ;;  %v650_v8 = vadd.f32 %v649_v6, %v648_v4 }
  0xc7   : > { %v639_v9 = vadd.f32 %v638_v7, %v637_v5  ;;  %v651_v10 = vrot.slane %v650_v8, 2 }
  0xc9   : > { %v640_v11 = vrot.slane %v639_v9, 1  ;;  %v652_v12 = vadd.f32 %v651_v10, %v650_v8 }
  0xcb   : > { %v641_v14 = vadd.f32 %v640_v11, %v639_v9  ;;  %v653_v15 = vrot.slane %v652_v12, 1 }
  0xcd   : > { %v642_v17 = vadd.f32 %v641_v14, %v632_v13  ;;  %v654_v18 = vadd.f32 %v653_v15, %v652_v12 }
  0xcf   : > { %643 = vst [vmem:[%s1199_s29] sm:$0x1] %v642_v17  ;;  %v655_v19 = vadd.f32 %v654_v18, %v644_v16 }
  0xd1   : > { %656 = vst [vmem:[%s1205_s7] sm:$0x1] %v655_v19 }
  0xd2 PF: > { %s16_s20 = sadd.s32 1, %s1038_s20   ;;  %s1235_s18 = smov %s1034_s19 }
  0xd3   : > { %p13_p5 = scmp.ge.s32.totalorder %s16_s20, 4   ;;  %s1236_s19 = smov %s1238_s21 }
  0xd5   :  { %15 = sbr.rel (!%p13_p5) target bundleno = 2 (0x2), region = 90 }

// kernel: _lambda_.15
= control target key start
LH: loop header
LB: loop body
LE: loop exit
PB: predicated region body
PF: predicated region fallthrough
CT: control target
= control target key end

     0   :  { %s1222_s1 = inlined_call_operand.vmem [shape: bf16[1024,128], index: 1, kind: input, shape index: {}]   ;;  %s1223_s2 = inlined_call_operand.vmem [shape: f32[1,128], index: 2, kind: input, shape index: {}]   ;;  %s1224_s0 = inlined_call_operand.vmem [shape: bf16[8,1024], index: 0, kind: input, shape index: {}]   ;;  %s1225_s3 = inlined_call_operand.vmem [shape: f32[8,128], index: 3, kind: output, shape index: {}]  }
   0x1   :  { %v934_v0 = vld [vmem:[%s1222_s1 + $0x38] sm:$0xff]  ;;  %v933_v4 = vld [vmem:[%s1222_s1 + $0x30] sm:$0xff]  ;;  %v932_v8 = vld [vmem:[%s1222_s1 + $0x28] sm:$0xff] }
   0x2   :  { %v942_v1 = vld [vmem:[%s1222_s1 + $0x78] sm:$0xff]  ;;  %562 = vmatpush.bf16.msra.mxu0 %v934_v0  ;;  %v941_v5 = vld [vmem:[%s1222_s1 + $0x70] sm:$0xff]  ;;  %v940_v9 = vld [vmem:[%s1222_s1 + $0x68] sm:$0xff] }
   0x3   :  { %v950_v2 = vld [vmem:[%s1222_s1 + $0xb8] sm:$0xff]  ;;  %575 = vmatpush.bf16.msra.mxu1 %v942_v1  ;;  %v949_v6 = vld [vmem:[%s1222_s1 + $0xb0] sm:$0xff]  ;;  %v948_v10 = vld [vmem:[%s1222_s1 + $0xa8] sm:$0xff] }
   0x4   :  { %v958_v3 = vld [vmem:[%s1222_s1 + $0xf8] sm:$0xff]  ;;  %588 = vmatpush.bf16.msra.mxu2 %v950_v2  ;;  %v957_v7 = vld [vmem:[%s1222_s1 + $0xf0] sm:$0xff]  ;;  %v956_v11 = vld [vmem:[%s1222_s1 + $0xe8] sm:$0xff] }
   0x5   :  { %601 = vmatpush.bf16.msra.mxu3 %v958_v3  ;;  %v931_v12 = vld [vmem:[%s1222_s1 + $0x20] sm:$0xff]  ;;  %v930_v16 = vld [vmem:[%s1222_s1 + $0x18] sm:$0xff]  ;;  %v929_v20 = vld [vmem:[%s1222_s1 + $0x10] sm:$0xff] }
   0x6   :  { %563 = vmatpush.bf16.msra.mxu0 %v933_v4  ;;  %v939_v13 = vld [vmem:[%s1222_s1 + $0x60] sm:$0xff]  ;;  %v938_v17 = vld [vmem:[%s1222_s1 + $0x58] sm:$0xff]  ;;  %v937_v21 = vld [vmem:[%s1222_s1 + $0x50] sm:$0xff] }
   0x7   :  { %576 = vmatpush.bf16.msra.mxu1 %v941_v5  ;;  %v947_v14 = vld [vmem:[%s1222_s1 + $0xa0] sm:$0xff]  ;;  %v946_v18 = vld [vmem:[%s1222_s1 + $0x98] sm:$0xff]  ;;  %v945_v22 = vld [vmem:[%s1222_s1 + $0x90] sm:$0xff] }
   0x8   :  { %589 = vmatpush.bf16.msra.mxu2 %v949_v6  ;;  %v955_v15 = vld [vmem:[%s1222_s1 + $0xe0] sm:$0xff]  ;;  %v954_v19 = vld [vmem:[%s1222_s1 + $0xd8] sm:$0xff]  ;;  %v953_v23 = vld [vmem:[%s1222_s1 + $0xd0] sm:$0xff] }
   0x9   :  { %602 = vmatpush.bf16.msra.mxu3 %v957_v7  ;;  %v928_v24 = vld [vmem:[%s1222_s1 + $0x8] sm:$0xff]  ;;  %v14_v29 = vld [vmem:[%s1224_s0] sm:$0xff]  ;;  %v966_v38 = vld [vmem:[%s1222_s1 + $0x138] sm:$0xff] }
   0xa   :  { %564 = vmatpush.bf16.msra.mxu0 %v932_v8  ;;  %v936_v25 = vld [vmem:[%s1222_s1 + $0x48] sm:$0xff]  ;;  %v927_v30 = vld [vmem:[%s1222_s1] sm:$0xff]  ;;  %v154_v36 = vunpack.c.l.b16 %v14_v29  ;;  %v155_v37 = vunpack.c.h.b16 %v14_v29  ;;  %v974_v39 = vld [vmem:[%s1222_s1 + $0x178] sm:$0xff] }
   0xb   :  { %577 = vmatpush.bf16.msra.mxu1 %v940_v9  ;;  %v944_v26 = vld [vmem:[%s1222_s1 + $0x88] sm:$0xff]  ;;  %v935_v31 = vld [vmem:[%s1222_s1 + $0x40] sm:$0xff]  ;;  %v982_v40 = vld [vmem:[%s1222_s1 + $0x1b8] sm:$0xff] }
   0xc   :  { %590 = vmatpush.bf16.msra.mxu2 %v948_v10  ;;  %v952_v27 = vld [vmem:[%s1222_s1 + $0xc8] sm:$0xff]  ;;  %v943_v34 = vld [vmem:[%s1222_s1 + $0x80] sm:$0xff]  ;;  %v990_v41 = vld [vmem:[%s1222_s1 + $0x1f8] sm:$0xff]  ;;  %v162_v44 = vpack.c.b16 %v154_v36, %v154_v36  ;;  %v163_v45 = vpack.c.b16 %v155_v37, %v155_v37 }
   0xd   :  { %603 = vmatpush.bf16.msra.mxu3 %v956_v11  ;;  %v15_v28 = vld [vmem:[%s1224_s0 + $0x8] sm:$0xff]  ;;  %v951_v35 = vld [vmem:[%s1222_s1 + $0xc0] sm:$0xff]  ;;  %v965_v46 = vld [vmem:[%s1222_s1 + $0x130] sm:$0xff] }
   0xe   :  { %565 = vmatpush.bf16.msra.mxu0 %v931_v12  ;;  %v156_v32 = vunpack.c.l.b16 %v15_v28  ;;  %v157_v33 = vunpack.c.h.b16 %v15_v28  ;;  %v973_v47 = vld [vmem:[%s1222_s1 + $0x170] sm:$0xff]  ;;  %v964_v50 = vld [vmem:[%s1222_s1 + $0x128] sm:$0xff]  ;;  %v963_v54 = vld [vmem:[%s1222_s1 + $0x120] sm:$0xff] }
   0xf   :  { %578 = vmatpush.bf16.msra.mxu1 %v939_v13  ;;  %v981_v48 = vld [vmem:[%s1222_s1 + $0x1b0] sm:$0xff]  ;;  %v972_v51 = vld [vmem:[%s1222_s1 + $0x168] sm:$0xff]  ;;  %v971_v55 = vld [vmem:[%s1222_s1 + $0x160] sm:$0xff] }
  0x10   :  { %591 = vmatpush.bf16.msra.mxu2 %v947_v14  ;;  %v164_v42 = vpack.c.b16 %v156_v32, %v156_v32  ;;  %v165_v43 = vpack.c.b16 %v157_v33, %v157_v33  ;;  %v989_v49 = vld [vmem:[%s1222_s1 + $0x1f0] sm:$0xff]  ;;  %v980_v52 = vld [vmem:[%s1222_s1 + $0x1a8] sm:$0xff]  ;;  %v979_v56 = vld [vmem:[%s1222_s1 + $0x1a0] sm:$0xff] }
  0x11   :  { %604 = vmatpush.bf16.msra.mxu3 %v955_v15  ;;  %v988_v53 = vld [vmem:[%s1222_s1 + $0x1e8] sm:$0xff]  ;;  %v987_v57 = vld [vmem:[%s1222_s1 + $0x1e0] sm:$0xff]  ;;  %v962_v58 = vld [vmem:[%s1222_s1 + $0x118] sm:$0xff] }
  0x12   :  { %566 = vmatpush.bf16.msra.mxu0 %v930_v16  ;;  %v970_v59 = vld [vmem:[%s1222_s1 + $0x158] sm:$0xff]  ;;  %v961_v62 = vld [vmem:[%s1222_s1 + $0x110] sm:$0xff]  ;;  %v960_v2 = vld [vmem:[%s1222_s1 + $0x108] sm:$0xff] }
  0x13   :  { %579 = vmatpush.bf16.msra.mxu1 %v938_v17  ;;  %v978_v60 = vld [vmem:[%s1222_s1 + $0x198] sm:$0xff]  ;;  %v969_v63 = vld [vmem:[%s1222_s1 + $0x150] sm:$0xff]  ;;  %v968_v3 = vld [vmem:[%s1222_s1 + $0x148] sm:$0xff] }
  0x14   :  { %592 = vmatpush.bf16.msra.mxu2 %v946_v18  ;;  %v986_v61 = vld [vmem:[%s1222_s1 + $0x1d8] sm:$0xff]  ;;  %v977_v0 = vld [vmem:[%s1222_s1 + $0x190] sm:$0xff]  ;;  %v976_v5 = vld [vmem:[%s1222_s1 + $0x188] sm:$0xff] }
  0x15   :  { %605 = vmatpush.bf16.msra.mxu3 %v954_v19  ;;  %v985_v1 = vld [vmem:[%s1222_s1 + $0x1d0] sm:$0xff]  ;;  %v984_v6 = vld [vmem:[%s1222_s1 + $0x1c8] sm:$0xff]  ;;  %v17_v7 = vld [vmem:[%s1224_s0 + $0x18] sm:$0xff] }
  0x16   :  { %567 = vmatpush.bf16.msra.mxu0 %v929_v20  ;;  %v16_v4 = vld [vmem:[%s1224_s0 + $0x10] sm:$0xff]  ;;  %v959_v10 = vld [vmem:[%s1222_s1 + $0x100] sm:$0xff]  ;;  %v160_v12 = vunpack.c.l.b16 %v17_v7  ;;  %v161_v13 = vunpack.c.h.b16 %v17_v7 }
  0x17   :  { %580 = vmatpush.bf16.msra.mxu1 %v937_v21  ;;  %v158_v8 = vunpack.c.l.b16 %v16_v4  ;;  %v159_v9 = vunpack.c.h.b16 %v16_v4  ;;  %v967_v11 = vld [vmem:[%s1222_s1 + $0x140] sm:$0xff] }
  0x18   :  { %593 = vmatpush.bf16.msra.mxu2 %v945_v22  ;;  %v975_v14 = vld [vmem:[%s1222_s1 + $0x180] sm:$0xff]  ;;  %v168_v18 = vpack.c.b16 %v160_v12, %v160_v12  ;;  %v169_v19 = vpack.c.b16 %v161_v13, %v161_v13 }
  0x19   :  { %606 = vmatpush.bf16.msra.mxu3 %v953_v23  ;;  %v983_v15 = vld [vmem:[%s1222_s1 + $0x1c0] sm:$0xff]  ;;  %v166_v16 = vpack.c.b16 %v158_v8, %v158_v8  ;;  %v167_v17 = vpack.c.b16 %v159_v9, %v159_v9 }
  0x1a   :  { %568 = vmatpush.bf16.msra.mxu0 %v928_v24 }
  0x1b   :  { %581 = vmatpush.bf16.msra.mxu1 %v936_v25 }
  0x1c   :  { %594 = vmatpush.bf16.msra.mxu2 %v944_v26  ;;  %v991_v26 = vld [vmem:[%s1223_s2] ss:$0 sm:$0xff] }
  0x1d   :  { %607 = vmatpush.bf16.msra.mxu3 %v952_v27 }
  0x1e   :  { %569 = vmatpush.bf16.msra.mxu0 %v927_v30 }
  0x1f   :  { %582 = vmatpush.bf16.msra.mxu1 %v935_v31 }
  0x20   :  { %595 = vmatpush.bf16.msra.mxu2 %v943_v34 }
  0x21   :  { %608 = vmatpush.bf16.msra.mxu3 %v951_v35  ;;  %570 = vmatmul.bf16.vlgmr.msra.gmra.mxu0 %v162_v44 }
  0x22   :  { %614 = vmatpush.bf16.msrb.mxu0 %v966_v38  ;;  %583 = vmatmul.bf16.vlgmr.msra.gmra.mxu1 %v163_v45 }
  0x23   :  { %627 = vmatpush.bf16.msrb.mxu1 %v974_v39  ;;  %596 = vmatmul.bf16.vlgmr.msra.gmra.mxu2 %v164_v42 }
  0x24   :  { %640 = vmatpush.bf16.msrb.mxu2 %v982_v40  ;;  %609 = vmatmul.bf16.vlgmr.msra.gmra.mxu3 %v165_v43 }
  0x25   :  { %653 = vmatpush.bf16.msrb.mxu3 %v990_v41 }
  0x26   :  { %615 = vmatpush.bf16.msrb.mxu0 %v965_v46 }
  0x27   :  { %628 = vmatpush.bf16.msrb.mxu1 %v973_v47 }
  0x28   :  { %641 = vmatpush.bf16.msrb.mxu2 %v981_v48 }
  0x29   :  { %654 = vmatpush.bf16.msrb.mxu3 %v989_v49 }
  0x2a   :  { %616 = vmatpush.bf16.msrb.mxu0 %v964_v50 }
  0x2b   :  { %629 = vmatpush.bf16.msrb.mxu1 %v972_v51 }
  0x2c   :  { %642 = vmatpush.bf16.msrb.mxu2 %v980_v52 }
  0x2d   :  { %655 = vmatpush.bf16.msrb.mxu3 %v988_v53 }
  0x2e   :  { %617 = vmatpush.bf16.msrb.mxu0 %v963_v54 }
  0x2f   :  { %630 = vmatpush.bf16.msrb.mxu1 %v971_v55 }
  0x30   :  { %643 = vmatpush.bf16.msrb.mxu2 %v979_v56 }
  0x31   :  { %656 = vmatpush.bf16.msrb.mxu3 %v987_v57 }
  0x32   :  { %618 = vmatpush.bf16.msrb.mxu0 %v962_v58 }
  0x33   :  { %631 = vmatpush.bf16.msrb.mxu1 %v970_v59 }
  0x34   :  { %644 = vmatpush.bf16.msrb.mxu2 %v978_v60 }
  0x35   :  { %657 = vmatpush.bf16.msrb.mxu3 %v986_v61 }
  0x36   :  { %619 = vmatpush.bf16.msrb.mxu0 %v961_v62 }
  0x37   :  { %632 = vmatpush.bf16.msrb.mxu1 %v969_v63 }
  0x38   :  { %645 = vmatpush.bf16.msrb.mxu2 %v977_v0 }
  0x39   :  { %658 = vmatpush.bf16.msrb.mxu3 %v985_v1 }
  0x3a   :  { %620 = vmatpush.bf16.msrb.mxu0 %v960_v2 }
  0x3b   :  { %633 = vmatpush.bf16.msrb.mxu1 %v968_v3 }
  0x3c   :  { %646 = vmatpush.bf16.msrb.mxu2 %v976_v5 }
  0x3d   :  { %659 = vmatpush.bf16.msrb.mxu3 %v984_v6 }
  0x3e   :  { %621 = vmatpush.bf16.msrb.mxu0 %v959_v10 }
  0x3f   :  { %634 = vmatpush.bf16.msrb.mxu1 %v967_v11 }
  0x40   :  { %647 = vmatpush.bf16.msrb.mxu2 %v975_v14 }
  0x41   :  { %660 = vmatpush.bf16.msrb.mxu3 %v983_v15  ;;  %622 = vmatmul.bf16.vlgmr.msrb.gmra.mxu0 %v166_v16 }
  0x42   :  { %635 = vmatmul.bf16.vlgmr.msrb.gmra.mxu1 %v167_v17 }
  0x43   :  { %648 = vmatmul.bf16.vlgmr.msrb.gmra.mxu2 %v168_v18 }
  0x44   :  { %661 = vmatmul.bf16.vlgmr.msrb.gmra.mxu3 %v169_v19 }
  0x9e   :  { %v571_v20 = vpop.f32.mrf.mxu0 }
  0x9f   :  { %v584_v21 = vpop.f32.mrf.mxu1  ;;  %v572_v29 = vadd.f32 %v991_v26, %v571_v20 }
  0xa1   :  { %v585_v30 = vadd.f32 %v584_v21, %v572_v29 }
  0xa6   :  { %v597_v22 = vpop.f32.mrf.mxu2  ;;  %v573_v24 = vpop.f32.mrf.mxu0 }
  0xa7   :  { %v610_v23 = vpop.f32.mrf.mxu3  ;;  %v586_v25 = vpop.f32.mrf.mxu1  ;;  %v598_v31 = vadd.f32 %v597_v22, %v585_v30 }
  0xa9   :  { %v611_v32 = vadd.f32 %v610_v23, %v598_v31 }
  0xae   :  { %v599_v27 = vpop.f32.mrf.mxu2 }
  0xaf   :  { %v612_v28 = vpop.f32.mrf.mxu3 }
  0xbe   :  { %v623_v33 = vpop.f32.mrf.mxu0 }
  0xbf   :  { %v636_v34 = vpop.f32.mrf.mxu1  ;;  %v624_v35 = vadd.f32 %v623_v33, %v611_v32 }
  0xc1   :  { %v637_v36 = vadd.f32 %v636_v34, %v624_v35 }
  0xc6   :  { %v649_v37 = vpop.f32.mrf.mxu2  ;;  %v625_v40 = vpop.f32.mrf.mxu0 }
  0xc7   :  { %v662_v38 = vpop.f32.mrf.mxu3  ;;  %v650_v39 = vadd.f32 %v649_v37, %v637_v36  ;;  %v638_v41 = vpop.f32.mrf.mxu1 }
  0xc9   :  { %v663_v42 = vadd.f32 %v662_v38, %v650_v39 }
  0xcb   :  { %666 = vst [vmem:[%s1225_s3] sm:$0xff] %v663_v42 }
  0xce   :  { %v651_v43 = vpop.f32.mrf.mxu2 }
  0xcf   :  { %v664_v44 = vpop.f32.mrf.mxu3 }

</bundles_post_ra>
